<compile_context>
chip_gen: v7x
topology: tpu7x:2x2x1
jax: 0.10.0
libtpu: 0.0.40
codegen_flags: <defaults>
</compile_context>

<pallas_src>
import functools

import jax
import jax.numpy as jnp
from jax import lax
from jax.experimental import pallas as pl
from jax.experimental.pallas import tpu as pltpu

_COMPUTE_DTYPE = jnp.bfloat16          # MXU input dtype (accumulation stays f32)
_VMEM_LIMIT = 32 * 1024 * 1024         # > v5e's 16 MiB scoped default, safe on v7x


# ----------------------------------------------------------------------------
# Pallas kernel: fused offset+mask stride-1 'same' conv, im2col done in-kernel.
# ----------------------------------------------------------------------------
def _fused_conv_kernel(xp_ref, w_ref, b_ref, o_ref, *, K, H, W, off_ch):
    # xp_ref: (1, H+K-1, W+K-1, C)  zero-padded channels-last input (bf16)
    # w_ref : (K*K, C, Co)          per-tap weights, Co = off_ch + mask_ch (bf16)
    # b_ref : (1, Co)               f32 bias
    # o_ref : (1, H*W, Co)          offsets raw, mask lanes sigmoided
    xp = xp_ref[0]                                    # (Hp, Wp, C)
    w = w_ref[...]                                    # (KK, C, Co)
    C = xp.shape[-1]
    Co = w.shape[-1]

    acc = jnp.zeros((H * W, Co), jnp.float32)
    for kh in range(K):                               # static KK-unrolled taps
        for kw in range(K):
            win = xp[kh:kh + H, kw:kw + W, :].reshape(H * W, C)
            acc += jnp.dot(win, w[kh * K + kw],
                           preferred_element_type=jnp.float32)
    acc = acc + b_ref[...]

    # sigmoid only on the mask lanes (channels >= off_ch)
    lane = lax.broadcasted_iota(jnp.int32, acc.shape, 1)
    acc = jnp.where(lane >= off_ch, jax.nn.sigmoid(acc), acc)
    o_ref[0] = acc.astype(o_ref.dtype)


def fused_offset_mask_conv(x, off_w, off_b, mask_w, mask_b, pad):
    """[conv_offset(x), sigmoid(conv_mask(x))] in one Pallas pass.

    x: (N, C, H, W) NCHW.  Returns (N, H*W, off_ch + mask_ch) channels-last.
    """
    N, C, H, W = x.shape
    K = off_w.shape[-1]
    KK = K * K
    assert 2 * pad == K - 1, "stride-1 'same' conv expected"
    off_ch = off_w.shape[0]
    co = off_ch + mask_w.shape[0]
    HW = H * W
    Hp, Wp = H + 2 * pad, W + 2 * pad

    xp = jnp.pad(x, ((0, 0), (0, 0), (pad, pad), (pad, pad)))
    xp = xp.transpose(0, 2, 3, 1).astype(_COMPUTE_DTYPE)          # (N, Hp, Wp, C)
    w = jnp.concatenate([off_w, mask_w], axis=0)                  # (Co, C, K, K)
    w_taps = w.transpose(2, 3, 1, 0).reshape(KK, C, co)           # tap-major
    w_taps = w_taps.astype(_COMPUTE_DTYPE)
    b = jnp.concatenate([off_b, mask_b], axis=0).reshape(1, co).astype(jnp.float32)

    return pl.pallas_call(
        functools.partial(_fused_conv_kernel, K=K, H=H, W=W, off_ch=off_ch),
        out_shape=jax.ShapeDtypeStruct((N, HW, co), jnp.float32),
        grid_spec=pltpu.PrefetchScalarGridSpec(
            num_scalar_prefetch=0,
            grid=(N,),
            in_specs=[
                pl.BlockSpec((1, Hp, Wp, C), lambda n: (n, 0, 0, 0)),
                pl.BlockSpec((KK, C, co), lambda n: (0, 0, 0)),     # resident
                pl.BlockSpec((1, co), lambda n: (0, 0)),            # resident
            ],
            out_specs=pl.BlockSpec((1, HW, co), lambda n: (n, 0, 0)),
        ),
        compiler_params=pltpu.CompilerParams(
            dimension_semantics=("parallel",),
            vmem_limit_bytes=_VMEM_LIMIT),
    )(xp, w_taps, b)


# ----------------------------------------------------------------------------
# Pallas kernel: modulated deformable conv core (all KK taps per grid step).
# ----------------------------------------------------------------------------
def _deform_kernel(xg_ref, pos_ref, qrc_ref, w_ref, o_ref, acc_ref, *, KK):
    # xg_ref : (1, 1, HW_in, Cg)   channel group of the input (bf16)
    # pos_ref: (1, 1, KK, TQ, 3)   [...,0]=abs sample row, 1=abs col, 2=mask
    # qrc_ref: (2, HW_in)          row 0: pixel row index, row 1: pixel col index
    # w_ref  : (G, KK, Cg, Cout)   full conv weight (f32), resident in VMEM
    # o_ref  : (1, TQ, Cout)
    # acc_ref: (TQ, Cout) f32 scratch accumulator over the offset-group axis
    g = pl.program_id(2)

    @pl.when(g == 0)
    def _():
        acc_ref[...] = jnp.zeros_like(acc_ref)

    posb = pos_ref[0, 0]                         # (KK, TQ, 3)
    TQ = posb.shape[1]
    qrc = qrc_ref[...]                           # (2, HW_in)
    HW_in = qrc.shape[1]

    y = posb[:, :, 0:1]                          # (KK, TQ, 1) sample rows
    xs = posb[:, :, 1:2]                         # (KK, TQ, 1) sample cols
    m = posb[:, :, 2:3]                          # (KK, TQ, 1) modulation
    q_row = qrc[0:1, :][None]                    # (1, 1, HW_in)
    q_col = qrc[1:2, :][None]                    # (1, 1, HW_in)

    # Bilinear sampling matrix for ALL KK taps at once, mask folded in.
    # Zero padding outside the image falls out of the hat support (<1 px).
    S = (jnp.maximum(0.0, 1.0 - jnp.abs(q_row - y)) *
         jnp.maximum(0.0, 1.0 - jnp.abs(q_col - xs)) * m)        # (KK, TQ, HW_in)

    xg = xg_ref[0, 0]                                            # (HW_in, Cg) bf16
    samp = jnp.dot(S.reshape(KK * TQ, HW_in).astype(_COMPUTE_DTYPE),
                   xg,
                   preferred_element_type=jnp.float32)           # (KK*TQ, Cg)

    wg = w_ref[g]                                                # (KK, Cg, Cout)
    acc = acc_ref[...]
    for k in range(KK):                                          # tiny f32 matmuls
        acc = acc + jnp.dot(samp[k * TQ:(k + 1) * TQ, :], wg[k],
                            preferred_element_type=jnp.float32)
    acc_ref[...] = acc

    @pl.when(g == pl.num_programs(2) - 1)
    def _():
        o_ref[0] = acc_ref[...].astype(o_ref.dtype)


def _pick_q_tile(hw, kk):
    """Largest output-row tile dividing HW whose sampling matrix (f32 tile +
    bf16 staging copy) stays within a few MiB of VMEM."""
    cands = [t for t in (512, 256, 128) if hw % t == 0]
    if not cands:
        return hw
    budget = 8 * 1024 * 1024
    for t in cands:                       # descending
        if kk * t * hw * 6 <= budget:
            return t
    return cands[-1]


def deform_conv_forward(x, params, kernel_size=3, padding=1, off_set_groups=2):
    """Forward of the `deform_conv` module. x: (N, C, H, W) NCHW -> NCHW."""
    N, C, H, W = x.shape
    K, G = kernel_size, off_set_groups
    KK = K * K
    Cg = C // G
    HW = H * W
    Cout = params['conv_w'].shape[0]
    off_ch = 2 * KK * G

    # ---- offset / mask pre-pass (single fused Pallas conv) -----------------
    om = fused_offset_mask_conv(x, params['off_w'], params['off_b'],
                                params['mask_w'], params['mask_b'], padding)
    # torchvision channel layout: offset channel = g*2*KK + 2*k + {0: dy, 1: dx}
    off = om[:, :, :off_ch].reshape(N, HW, G, KK, 2)
    off_y = off[..., 0].transpose(0, 2, 3, 1)                    # (N, G, KK, HW)
    off_x = off[..., 1].transpose(0, 2, 3, 1)
    msk = om[:, :, off_ch:].reshape(N, HW, G, KK).transpose(0, 2, 3, 1)

    # absolute sample positions per tap + modulation, packed so ONE DMA per
    # grid step carries all KK taps of a q-tile
    grid_r = jnp.repeat(jnp.arange(H, dtype=jnp.float32), W)     # (HW,)
    grid_c = jnp.tile(jnp.arange(W, dtype=jnp.float32), H)       # (HW,)
    taps_r = jnp.array([kh for kh in range(K) for kw in range(K)], jnp.float32)
    taps_c = jnp.array([kw for kh in range(K) for kw in range(K)], jnp.float32)
    base_y = grid_r[None, :] - padding + taps_r[:, None]         # (KK, HW)
    base_x = grid_c[None, :] - padding + taps_c[:, None]         # (KK, HW)
    pos = jnp.stack([off_y + base_y[None, None],
                     off_x + base_x[None, None],
                     msk], axis=-1)                              # (N, G, KK, HW, 3)

    # lane-dense input-pixel coordinates (replaces in-kernel iota // and %)
    qrc = jnp.stack([grid_r, grid_c], axis=0)                    # (2, HW)

    # input grouped by offset group, spatially flattened, channels last (bf16:
    # it only feeds the MXU sampling matmul; accumulation stays f32)
    xg = x.transpose(0, 2, 3, 1).reshape(N, HW, G, Cg).transpose(0, 2, 1, 3)
    xg = xg.astype(_COMPUTE_DTYPE)

    # conv weight (Cout, Cin, K, K) -> (G, KK, Cg, Cout), hoisted whole to VMEM
    w = params['conv_w'].transpose(2, 3, 1, 0).reshape(KK, G, Cg, Cout)
    w = w.transpose(1, 0, 2, 3).astype(jnp.float32)

    TQ = _pick_q_tile(HW, KK)
    out_flat = pl.pallas_call(
        functools.partial(_deform_kernel, KK=KK),
        out_shape=jax.ShapeDtypeStruct((N, HW, Cout), jnp.float32),
        grid_spec=pltpu.PrefetchScalarGridSpec(
            num_scalar_prefetch=0,
            grid=(N, HW // TQ, G),
            in_specs=[
                pl.BlockSpec((1, 1, HW, Cg), lambda n, q, g: (n, g, 0, 0)),
                pl.BlockSpec((1, 1, KK, TQ, 3), lambda n, q, g: (n, g, 0, q, 0)),
                pl.BlockSpec((2, HW), lambda n, q, g: (0, 0)),           # constant
                pl.BlockSpec((G, KK, Cg, Cout), lambda n, q, g: (0, 0, 0, 0)),
            ],
            out_specs=pl.BlockSpec((1, TQ, Cout), lambda n, q, g: (n, q, 0)),
            scratch_shapes=[pltpu.VMEM((TQ, Cout), jnp.float32)],
        ),
        compiler_params=pltpu.CompilerParams(
            dimension_semantics=("parallel", "parallel", "arbitrary"),
            vmem_limit_bytes=_VMEM_LIMIT),
    )(xg, pos, qrc, w)

    return out_flat.reshape(N, H, W, Cout).transpose(0, 3, 1, 2)  # back to NCHW


# ----------------------------------------------------------------------------
# Pure-JAX f32 references (for correctness check only)
# ----------------------------------------------------------------------------
def ref_conv2d(x, w, b, pad):
    out = lax.conv_general_dilated(
        x, w, (1, 1), ((pad, pad), (pad, pad)),
        dimension_numbers=('NCHW', 'OIHW', 'NCHW'), precision='highest')
    return out + b[None, :, None, None]


def ref_deform_conv2d(x, off_y, off_x, mask, weight, pad):
    N, C, H, W = x.shape
    Cout, _, K, _ = weight.shape
    G = off_y.shape[1]
    Cg = C // G
    hh = jnp.arange(H, dtype=jnp.float32)[:, None]
    ww = jnp.arange(W, dtype=jnp.float32)[None, :]
    out = jnp.zeros((N, Cout, H, W), jnp.float32)
    for g in range(G):
        xgrp = x[:, g * Cg:(g + 1) * Cg]
        for kh in range(K):
            for kw in range(K):
                k = kh * K + kw
                y = hh - pad + kh + off_y[:, g, k]
                xs = ww - pad + kw + off_x[:, g, k]
                y0 = jnp.floor(y)
                x0 = jnp.floor(xs)
                samp = jnp.zeros((N, Cg, H, W), jnp.float32)
                for dy in (0.0, 1.0):
                    for dx in (0.0, 1.0):
                        yi = y0 + dy
                        xi = x0 + dx
                        wgt = jnp.maximum(0.0, 1.0 - jnp.abs(y - yi)) * \
                              jnp.maximum(0.0, 1.0 - jnp.abs(xs - xi))
                        valid = (yi >= 0) & (yi < H) & (xi >= 0) & (xi < W)
                        yc = jnp.clip(yi, 0, H - 1).astype(jnp.int32)
                        xc = jnp.clip(xi, 0, W - 1).astype(jnp.int32)
                        gathered = jax.vmap(lambda img, a, c: img[:, a, c])(xgrp, yc, xc)
                        samp = samp + gathered * (wgt * valid)[:, None]
                samp = samp * mask[:, g, k][:, None]
                out = out + jnp.einsum('oc,nchw->nohw',
                                       weight[:, g * Cg:(g + 1) * Cg, kh, kw], samp,
                                       precision='highest')
    return out


# ----------------------------------------------------------------------------
if __name__ == "__main__":
    key = jax.random.PRNGKey(0)
    in_ch, out_ch, K, pad, G = 4, 4, 3, 1, 2
    N, H, W = 2, 16, 16
    KK = K * K
    ks = jax.random.split(key, 5)

    x = jax.random.normal(ks[0], (N, in_ch, H, W), jnp.float32)

    # Deterministic synthetic parameters (shapes match the module's __init__).
    params = {
        'conv_w': 0.2 * jax.random.normal(ks[1], (out_ch, in_ch, K, K), jnp.float32),
        'off_w': 0.1 * jax.random.normal(ks[2], (2 * KK * G, in_ch, K, K), jnp.float32),
        'off_b': 0.05 * jax.random.normal(ks[3], (2 * KK * G,), jnp.float32),
        'mask_w': jnp.full((G * KK, in_ch, K, K), 0.5, jnp.float32),  # module inits to 0.5
        'mask_b': 0.05 * jax.random.normal(ks[4], (G * KK,), jnp.float32),
        # note: self.conv.bias is NOT used by deform_conv2d(...) in forward()
    }

    out = jax.block_until_ready(deform_conv_forward(x, params, K, pad, G))

    # reference check (pure f32 path)
    off_r = ref_conv2d(x, params['off_w'], params['off_b'], pad).reshape(N, G, KK, 2, H, W)
    mask_r = jax.nn.sigmoid(
        ref_conv2d(x, params['mask_w'], params['mask_b'], pad)).reshape(N, G, KK, H, W)
    out_ref = ref_deform_conv2d(x, off_r[:, :, :, 0], off_r[:, :, :, 1], mask_r,
                                params['conv_w'], pad)

    assert out.shape == (N, out_ch, H, W)
    err = float(jnp.max(jnp.abs(out - out_ref)))
    # bf16 MXU inputs (with f32 accumulation) per the v6e/v7x guidance ->
    # slightly looser tolerance than a pure-f32 kernel would need.
    assert jnp.allclose(out, out_ref, atol=5e-2, rtol=5e-2), f"max abs err = {err}"
    print("KERNEL_OK")
</pallas_src>

<mosaic_0001>
module attributes {stable_mosaic.version = 11 : i64} {
  func.func @_fused_conv_kernel(%arg0: i32, %arg1: memref<1x18x18x4xbf16, #tpu.memory_space<vmem>>, %arg2: memref<9x4x54xbf16, #tpu.memory_space<vmem>>, %arg3: memref<1x54xf32, #tpu.memory_space<vmem>>, %arg4: memref<1x256x54xf32, #tpu.memory_space<vmem>>) attributes {dimension_semantics = [#tpu.dimension_semantics<parallel>], iteration_bounds = array<i64: 2>, scalar_prefetch = 0 : i64, scratch_operands = 0 : i64, tpu.core_type = #tpu.core_type<tc>, window_params = [{transform_indices = @transform_0, window_bounds = array<i64: 1, 18, 18, 4>}, {pipeline_mode = #tpu.pipeline_mode<synchronous>, transform_indices = @transform_1, window_bounds = array<i64: 9, 4, 54>}, {pipeline_mode = #tpu.pipeline_mode<synchronous>, transform_indices = @transform_2, window_bounds = array<i64: 1, 54>}, {transform_indices = @transform_3, window_bounds = array<i64: 1, 256, 54>}]} {
    %c0 = arith.constant 0 : index
    %c0_0 = arith.constant 0 : index
    %c0_1 = arith.constant 0 : index
    %c0_2 = arith.constant 0 : index
    %0 = vector.load %arg1[%c0, %c0_0, %c0_1, %c0_2] : memref<1x18x18x4xbf16, #tpu.memory_space<vmem>>, vector<1x18x18x4xbf16>
    %1 = vector.shape_cast %0 : vector<1x18x18x4xbf16> to vector<18x18x4xbf16>
    %c0_3 = arith.constant 0 : index
    %c0_4 = arith.constant 0 : index
    %c0_5 = arith.constant 0 : index
    %2 = vector.load %arg2[%c0_3, %c0_4, %c0_5] : memref<9x4x54xbf16, #tpu.memory_space<vmem>>, vector<9x4x54xbf16>
    %cst = arith.constant 0.000000e+00 : f32
    %3 = vector.broadcast %cst : f32 to vector<256x54xf32>
    %4 = vector.extract_strided_slice %1 {offsets = [0, 0, 0], sizes = [16, 16, 4], strides = [1, 1, 1]} : vector<18x18x4xbf16> to vector<16x16x4xbf16>
    %5 = vector.shape_cast %4 : vector<16x16x4xbf16> to vector<256x4xbf16>
    %6 = vector.extract_strided_slice %2 {offsets = [0, 0, 0], sizes = [1, 4, 54], strides = [1, 1, 1]} : vector<9x4x54xbf16> to vector<1x4x54xbf16>
    %7 = vector.shape_cast %6 : vector<1x4x54xbf16> to vector<4x54xbf16>
    %cst_6 = arith.constant dense<0.000000e+00> : vector<256x54xf32>
    %8 = tpu.matmul %5, %7, %cst_6 {dimension_numbers = #tpu.dot_dimension_numbers<[1], [0], [0], [1], [0, 0, 1, 1], [], []>} : vector<256x4xbf16>, vector<4x54xbf16>, vector<256x54xf32> -> vector<256x54xf32>
    %9 = arith.addf %3, %8 : vector<256x54xf32>
    %10 = vector.extract_strided_slice %1 {offsets = [0, 1, 0], sizes = [16, 16, 4], strides = [1, 1, 1]} : vector<18x18x4xbf16> to vector<16x16x4xbf16>
    %11 = vector.shape_cast %10 : vector<16x16x4xbf16> to vector<256x4xbf16>
    %12 = vector.extract_strided_slice %2 {offsets = [1, 0, 0], sizes = [1, 4, 54], strides = [1, 1, 1]} : vector<9x4x54xbf16> to vector<1x4x54xbf16>
    %13 = vector.shape_cast %12 : vector<1x4x54xbf16> to vector<4x54xbf16>
    %cst_7 = arith.constant dense<0.000000e+00> : vector<256x54xf32>
    %14 = tpu.matmul %11, %13, %cst_7 {dimension_numbers = #tpu.dot_dimension_numbers<[1], [0], [0], [1], [0, 0, 1, 1], [], []>} : vector<256x4xbf16>, vector<4x54xbf16>, vector<256x54xf32> -> vector<256x54xf32>
    %15 = arith.addf %9, %14 : vector<256x54xf32>
    %16 = vector.extract_strided_slice %1 {offsets = [0, 2, 0], sizes = [16, 16, 4], strides = [1, 1, 1]} : vector<18x18x4xbf16> to vector<16x16x4xbf16>
    %17 = vector.shape_cast %16 : vector<16x16x4xbf16> to vector<256x4xbf16>
    %18 = vector.extract_strided_slice %2 {offsets = [2, 0, 0], sizes = [1, 4, 54], strides = [1, 1, 1]} : vector<9x4x54xbf16> to vector<1x4x54xbf16>
    %19 = vector.shape_cast %18 : vector<1x4x54xbf16> to vector<4x54xbf16>
    %cst_8 = arith.constant dense<0.000000e+00> : vector<256x54xf32>
    %20 = tpu.matmul %17, %19, %cst_8 {dimension_numbers = #tpu.dot_dimension_numbers<[1], [0], [0], [1], [0, 0, 1, 1], [], []>} : vector<256x4xbf16>, vector<4x54xbf16>, vector<256x54xf32> -> vector<256x54xf32>
    %21 = arith.addf %15, %20 : vector<256x54xf32>
    %22 = vector.extract_strided_slice %1 {offsets = [1, 0, 0], sizes = [16, 16, 4], strides = [1, 1, 1]} : vector<18x18x4xbf16> to vector<16x16x4xbf16>
    %23 = vector.shape_cast %22 : vector<16x16x4xbf16> to vector<256x4xbf16>
    %24 = vector.extract_strided_slice %2 {offsets = [3, 0, 0], sizes = [1, 4, 54], strides = [1, 1, 1]} : vector<9x4x54xbf16> to vector<1x4x54xbf16>
    %25 = vector.shape_cast %24 : vector<1x4x54xbf16> to vector<4x54xbf16>
    %cst_9 = arith.constant dense<0.000000e+00> : vector<256x54xf32>
    %26 = tpu.matmul %23, %25, %cst_9 {dimension_numbers = #tpu.dot_dimension_numbers<[1], [0], [0], [1], [0, 0, 1, 1], [], []>} : vector<256x4xbf16>, vector<4x54xbf16>, vector<256x54xf32> -> vector<256x54xf32>
    %27 = arith.addf %21, %26 : vector<256x54xf32>
    %28 = vector.extract_strided_slice %1 {offsets = [1, 1, 0], sizes = [16, 16, 4], strides = [1, 1, 1]} : vector<18x18x4xbf16> to vector<16x16x4xbf16>
    %29 = vector.shape_cast %28 : vector<16x16x4xbf16> to vector<256x4xbf16>
    %30 = vector.extract_strided_slice %2 {offsets = [4, 0, 0], sizes = [1, 4, 54], strides = [1, 1, 1]} : vector<9x4x54xbf16> to vector<1x4x54xbf16>
    %31 = vector.shape_cast %30 : vector<1x4x54xbf16> to vector<4x54xbf16>
    %cst_10 = arith.constant dense<0.000000e+00> : vector<256x54xf32>
    %32 = tpu.matmul %29, %31, %cst_10 {dimension_numbers = #tpu.dot_dimension_numbers<[1], [0], [0], [1], [0, 0, 1, 1], [], []>} : vector<256x4xbf16>, vector<4x54xbf16>, vector<256x54xf32> -> vector<256x54xf32>
    %33 = arith.addf %27, %32 : vector<256x54xf32>
    %34 = vector.extract_strided_slice %1 {offsets = [1, 2, 0], sizes = [16, 16, 4], strides = [1, 1, 1]} : vector<18x18x4xbf16> to vector<16x16x4xbf16>
    %35 = vector.shape_cast %34 : vector<16x16x4xbf16> to vector<256x4xbf16>
    %36 = vector.extract_strided_slice %2 {offsets = [5, 0, 0], sizes = [1, 4, 54], strides = [1, 1, 1]} : vector<9x4x54xbf16> to vector<1x4x54xbf16>
    %37 = vector.shape_cast %36 : vector<1x4x54xbf16> to vector<4x54xbf16>
    %cst_11 = arith.constant dense<0.000000e+00> : vector<256x54xf32>
    %38 = tpu.matmul %35, %37, %cst_11 {dimension_numbers = #tpu.dot_dimension_numbers<[1], [0], [0], [1], [0, 0, 1, 1], [], []>} : vector<256x4xbf16>, vector<4x54xbf16>, vector<256x54xf32> -> vector<256x54xf32>
    %39 = arith.addf %33, %38 : vector<256x54xf32>
    %40 = vector.extract_strided_slice %1 {offsets = [2, 0, 0], sizes = [16, 16, 4], strides = [1, 1, 1]} : vector<18x18x4xbf16> to vector<16x16x4xbf16>
    %41 = vector.shape_cast %40 : vector<16x16x4xbf16> to vector<256x4xbf16>
    %42 = vector.extract_strided_slice %2 {offsets = [6, 0, 0], sizes = [1, 4, 54], strides = [1, 1, 1]} : vector<9x4x54xbf16> to vector<1x4x54xbf16>
    %43 = vector.shape_cast %42 : vector<1x4x54xbf16> to vector<4x54xbf16>
    %cst_12 = arith.constant dense<0.000000e+00> : vector<256x54xf32>
    %44 = tpu.matmul %41, %43, %cst_12 {dimension_numbers = #tpu.dot_dimension_numbers<[1], [0], [0], [1], [0, 0, 1, 1], [], []>} : vector<256x4xbf16>, vector<4x54xbf16>, vector<256x54xf32> -> vector<256x54xf32>
    %45 = arith.addf %39, %44 : vector<256x54xf32>
    %46 = vector.extract_strided_slice %1 {offsets = [2, 1, 0], sizes = [16, 16, 4], strides = [1, 1, 1]} : vector<18x18x4xbf16> to vector<16x16x4xbf16>
    %47 = vector.shape_cast %46 : vector<16x16x4xbf16> to vector<256x4xbf16>
    %48 = vector.extract_strided_slice %2 {offsets = [7, 0, 0], sizes = [1, 4, 54], strides = [1, 1, 1]} : vector<9x4x54xbf16> to vector<1x4x54xbf16>
    %49 = vector.shape_cast %48 : vector<1x4x54xbf16> to vector<4x54xbf16>
    %cst_13 = arith.constant dense<0.000000e+00> : vector<256x54xf32>
    %50 = tpu.matmul %47, %49, %cst_13 {dimension_numbers = #tpu.dot_dimension_numbers<[1], [0], [0], [1], [0, 0, 1, 1], [], []>} : vector<256x4xbf16>, vector<4x54xbf16>, vector<256x54xf32> -> vector<256x54xf32>
    %51 = arith.addf %45, %50 : vector<256x54xf32>
    %52 = vector.extract_strided_slice %1 {offsets = [2, 2, 0], sizes = [16, 16, 4], strides = [1, 1, 1]} : vector<18x18x4xbf16> to vector<16x16x4xbf16>
    %53 = vector.shape_cast %52 : vector<16x16x4xbf16> to vector<256x4xbf16>
    %54 = vector.extract_strided_slice %2 {offsets = [8, 0, 0], sizes = [1, 4, 54], strides = [1, 1, 1]} : vector<9x4x54xbf16> to vector<1x4x54xbf16>
    %55 = vector.shape_cast %54 : vector<1x4x54xbf16> to vector<4x54xbf16>
    %cst_14 = arith.constant dense<0.000000e+00> : vector<256x54xf32>
    %56 = tpu.matmul %53, %55, %cst_14 {dimension_numbers = #tpu.dot_dimension_numbers<[1], [0], [0], [1], [0, 0, 1, 1], [], []>} : vector<256x4xbf16>, vector<4x54xbf16>, vector<256x54xf32> -> vector<256x54xf32>
    %57 = arith.addf %51, %56 : vector<256x54xf32>
    %c0_15 = arith.constant 0 : index
    %c0_16 = arith.constant 0 : index
    %58 = vector.load %arg3[%c0_15, %c0_16] : memref<1x54xf32, #tpu.memory_space<vmem>>, vector<1x54xf32>
    %59 = vector.broadcast %58 : vector<1x54xf32> to vector<256x54xf32>
    %60 = arith.addf %57, %59 : vector<256x54xf32>
    %61 = tpu.iota {dimensions = array<i32: 1>} : vector<256x54xi32>
    %c36_i32 = arith.constant 36 : i32
    %62 = vector.broadcast %c36_i32 : i32 to vector<256x54xi32>
    %63 = arith.cmpi sge, %61, %62 : vector<256x54xi32>
    %64 = arith.negf %60 : vector<256x54xf32>
    %65 = math.exp %64 : vector<256x54xf32>
    %cst_17 = arith.constant 1.000000e+00 : f32
    %66 = vector.broadcast %cst_17 : f32 to vector<256x54xf32>
    %67 = arith.addf %66, %65 : vector<256x54xf32>
    %68 = arith.divf %66, %67 : vector<256x54xf32>
    %69 = arith.select %63, %68, %60 : vector<256x54xi1>, vector<256x54xf32>
    %c0_18 = arith.constant 0 : index
    %c0_19 = arith.constant 0 : index
    %c0_20 = arith.constant 0 : index
    %70 = vector.load %arg4[%c0_18, %c0_19, %c0_20] : memref<1x256x54xf32, #tpu.memory_space<vmem>>, vector<1x256x54xf32>
    %71 = vector.shape_cast %70 : vector<1x256x54xf32> to vector<256x54xf32>
    %72 = vector.shape_cast %69 : vector<256x54xf32> to vector<1x256x54xf32>
    tpu.vector_store %arg4[%c0_18, %c0_19, %c0_20], %72 {strides = array<i32>} : memref<1x256x54xf32, #tpu.memory_space<vmem>>, vector<1x256x54xf32>,
    return
  }
  func.func @transform_0(%arg0: i32) -> (i32, i32, i32, i32) {
    %c0_i32 = arith.constant 0 : i32
    %c0_i32_0 = arith.constant 0 : i32
    %c0_i32_1 = arith.constant 0 : i32
    %c0_i32_2 = arith.constant 0 : i32
    return %arg0, %c0_i32, %c0_i32_0, %c0_i32_1 : i32, i32, i32, i32
  }
  func.func @transform_1(%arg0: i32) -> (i32, i32, i32) {
    %c0_i32 = arith.constant 0 : i32
    %c0_i32_0 = arith.constant 0 : i32
    %c0_i32_1 = arith.constant 0 : i32
    %c0_i32_2 = arith.constant 0 : i32
    return %c0_i32, %c0_i32_0, %c0_i32_1 : i32, i32, i32
  }
  func.func @transform_2(%arg0: i32) -> (i32, i32) {
    %c0_i32 = arith.constant 0 : i32
    %c0_i32_0 = arith.constant 0 : i32
    %c0_i32_1 = arith.constant 0 : i32
    return %c0_i32, %c0_i32_0 : i32, i32
  }
  func.func @transform_3(%arg0: i32) -> (i32, i32, i32) {
    %c0_i32 = arith.constant 0 : i32
    %c0_i32_0 = arith.constant 0 : i32
    %c0_i32_1 = arith.constant 0 : i32
    return %arg0, %c0_i32, %c0_i32_0 : i32, i32, i32
  }
}

</mosaic_0001>

<bundles_post_ra>
// kernel: tpu_custom_call.1
= control target key start
LH: loop header
LB: loop body
LE: loop exit
PB: predicated region body
PF: predicated region fallthrough
CT: control target
= control target key end

     0   :  { %s4407_s12 = smov 0   ;;  %s5690_s0 = inlined_call_operand.vmem [shape: bf16[2,18,18,4], index: 0, kind: input, shape index: {}]   ;;  %s5691_s1 = inlined_call_operand.vmem [shape: bf16[9,4,54], index: 1, kind: input, shape index: {}]   ;;  %s5692_s2 = inlined_call_operand.vmem [shape: f32[1,54], index: 2, kind: input, shape index: {}]   ;;  %s5693_s3 = inlined_call_operand.vmem [shape: f32[2,256,54], index: 3, kind: output, shape index: {}]  }
   0x1 LB: > { %s3233_s13 = sadd.s32 4294967295, %s4385_s12   ;;  %p3237_p0 = scmp.ge.s32.totalorder %s4385_s12, 1  ;;  %s4385_s12 = sphi %s4407_s12, %s13_s12  }
   0x2   : > { %p137_p1 = scmp.lt.s32.totalorder %s4385_s12, 3 }
   0x4   : > { %p138_p2 = pnand %p3237_p0, %p137_p1 }
   0x6   : > { %141 = sbr.rel (%p138_p2) target bundleno = 584 (0x248), region = 32 }
   0xd   : > { %v227_v0 = vld [vmem:[%s5691_s1 + $0x2] sm:$0x3]  ;;  %vm719_vm0 = vcmask 1041408   ;;  %v230_v1 = vld [vmem:[%s5691_s1 + $0x8] sm:$0x3]  ;;  %p161_p3 = scmp.lt.s32.totalorder %s3233_s13, 1 }
   0xe   : > { %4210 = vmatprep.subr.msk.bf16.mxu1 %vm719_vm0, %v227_v0  ;;  %4214 = vmatprep.subr.msk.bf16.mxu0 %vm719_vm0, %v230_v1  ;;  %v721_v2 = vsel %vm719_vm0, %v227_v0, 0  ;;  %v4425_v3 = vsel %vm719_vm0, %v230_v1, 0  ;;  %v226_v4 = vld [vmem:[%s5691_s1] sm:$0x3]  ;;  %v231_v5 = vld [vmem:[%s5691_s1 + $0xa] sm:$0x3] }
   0xf   : > { %5725 = vst [vmem:[#allocation2_spill] sm:$0xff] %v4425_v3  ;;  %3647 = vmatpush3.bf16.msra.mxu1 %v721_v2  ;;  %3783 = vmatpush3.bf16.msra.mxu0 %v4425_v3  ;;  %s5772_s13 = smov (!%p161_p3, %s3233_s13), 1  ;;  %vm235_vm1 = vsmask.f32 3328  ;;  %vm236_vm2 = vsmask.f32 7440 }
  0x10   : > { %4211 = vmatprep.subr.msk.bf16.mxu1 %vm719_vm0, %v226_v4  ;;  %4216 = vmatprep.subr.msk.bf16.mxu0 %vm719_vm0, %v231_v5  ;;  %s4220_s22 = smul.u32 216, %s5772_s13  ;;  %v4445_v6 = vsel %vm719_vm0, %v226_v4, 0  ;;  %v4448_v7 = vsel %vm719_vm0, %v231_v5, 0  ;;  %v4453_v8 = vld [vmem:[%s5691_s1 + $0xc] sm:$0x3]  ;;  %vm670_vm3 = vcmask 31744   ;;  %vm4489_vm4 = vmor %vm235_vm1, %vm236_vm2 }
  0x11   : > { %v4477_v20 = vsel %vm719_vm0, %v4453_v8, 0  ;;  %vm1192_vm5 = vcmask 1042432   ;;  %vm1193_vm6 = vcmask 1046532   ;;  %s3492_s15 = sshll.u32 %s5772_s13, 8  ;;  %vm3145_vm9 = vcmask 441344  }
  0x12   : > { %s4442_s25 = scalar_lea.vmem %s5690_s0, %s4220_s22  ;;  %vm4670_vm7 = vmor %vm1192_vm5, %vm1193_vm6  ;;  %s5451_s17 = scalar_lea.vmem %s5693_s3, %s3492_s15 }
  0x13   : > { %v4456_v9 = vld [vmem:[%s4442_s25] sm:$0xf]  ;;  %v4459_v10 = vld [vmem:[%s4442_s25 + $0x4] sm:$0xf]  ;;  %v174_v11 = vld [vmem:[%s4442_s25 + $0x8] sm:$0x1] }
  0x14   : > { %v239_v12 = vshrl.u32 %v4456_v9, 16  ;;  %v242_v13 = vshll.u32 %v4456_v9, 16  ;;  %v248_v14 = vshll.u32 %v4459_v10, 16  ;;  %v252_v15 = vshrl.u32 %v4459_v10, 16  ;;  %v4467_v16 = vld [vmem:[%s4442_s25 + $0xc] sm:$0xf] }
  0x15   : > { %v258_v17 = vshll.u32 %v174_v11, 16  ;;  %v4470_v18 = vld [vmem:[%s4442_s25 + $0x10] sm:$0xf]  ;;  %v4473_v19 = vld [vmem:[%s4442_s25 + $0x14] sm:$0x1]  ;;  %v263_v26 = vshrl.u32 %v4467_v16, 16 }
  0x16   : > { %v241_v21 = vrot.slane %v239_v12, 4  ;;  %v244_v22 = vrot.slane %v242_v13, 5  ;;  %v250_v23 = vrot.slane %v248_v14, 5  ;;  %v254_v24 = vrot.slane %v252_v15, 4  ;;  %v4485_v33 = vld [vmem:[%s4442_s25 + $0x18] sm:$0xf] }
  0x17   : > { %v260_v25 = vrot.slane %v258_v17, 5  ;;  %v266_v27 = vshll.u32 %v4467_v16, 16  ;;  %v272_v28 = vshll.u32 %v4470_v18, 16  ;;  %v276_v31 = vshrl.u32 %v4470_v18, 16  ;;  %v4498_v39 = vld [vmem:[%s4442_s25 + $0x1c] sm:$0xf] }
  0x18   : > { %v245_v29 = vor.u32 %v244_v22, %v241_v21  ;;  %v255_v30 = vor.u32 %v254_v24, %v250_v23  ;;  %v282_v32 = vshll.u32 %v4473_v19, 16  ;;  %v265_v35 = vrot.slane %v263_v26, 4  ;;  %v4502_v46 = vld [vmem:[%s4442_s25 + $0x20] sm:$0x1]  ;;  %v4512_v57 = vld [vmem:[%s4442_s25 + $0x24] sm:$0xf] }
  0x19   : > { %v268_v36 = vrot.slane %v266_v27, 5  ;;  %v274_v37 = vrot.slane %v272_v28, 5  ;;  %v4495_v38 = vcombine.low %v4467_v16, %v4470_v18  ;;  %v278_v42 = vrot.slane %v276_v31, 4  ;;  %v4517_v62 = vld [vmem:[%s4442_s25 + $0x28] sm:$0xf] }
  0x1a   : > { %v246_v40 = vrot.slane %v245_v29, 4  ;;  %v256_v41 = vrot.slane %v255_v30, 4  ;;  %v284_v43 = vrot.slane %v282_v32, 5  ;;  %v1207_v45 = vrot.slane %v4473_v19, 5  ;;  %v4525_v4 = vld [vmem:[%s4442_s25 + $0x2c] sm:$0x1] }
  0x1b   : > { %v269_v44 = vor.u32 %v268_v36, %v265_v35  ;;  %v287_v47 = vshrl.u32 %v4485_v33, 16  ;;  %v290_v48 = vshll.u32 %v4485_v33, 16  ;;  %v279_v51 = vor.u32 %v278_v42, %v274_v37  ;;  %v4531_v14 = vld [vmem:[%s4442_s25 + $0x30] sm:$0xf]  ;;  %v4543_v28 = vld [vmem:[%s4442_s25 + $0x34] sm:$0xf] }
  0x1c   : > { %v251_v49 = vsel %vm4489_vm4, %v246_v40, %v250_v23  ;;  %v261_v50 = vsel %vm4489_vm4, %v256_v41, %v260_v25  ;;  %v296_v52 = vshll.u32 %v4498_v39, 16  ;;  %v300_v60 = vshrl.u32 %v4498_v39, 16  ;;  %v4538_v23 = vld [vmem:[%s5691_s1 + $0x4] sm:$0x3]  ;;  %v4550_v32 = vld [vmem:[%s4442_s25 + $0x38] sm:$0x1] }
  0x1d   : > { %v3241_v53 = vcombine.low %v251_v49, %v261_v50  ;;  %v270_v54 = vrot.slane %v269_v44, 4  ;;  %v289_v55 = vrot.slane %v287_v47, 4  ;;  %v292_v56 = vrot.slane %v290_v48, 5  ;;  %v4558_v48 = vld [vmem:[%s4442_s25 + $0x3c] sm:$0xf] }
  0x1e   : > { %v280_v58 = vrot.slane %v279_v51, 4  ;;  %v298_v59 = vrot.slane %v296_v52, 5  ;;  %v306_v61 = vshll.u32 %v4502_v46, 16  ;;  %v1211_v1 = vrot.slane %v4498_v39, 5  ;;  %v4566_v52 = vld [vmem:[%s4442_s25 + $0x40] sm:$0xf] }
  0x1f   : > { %3648 = vmatprep.mubr.msk.bf16.mxu1 %vm670_vm3, %v3241_v53  ;;  %v275_v63 = vsel %vm4489_vm4, %v270_v54, %v274_v37  ;;  %v293_v0 = vor.u32 %v292_v56, %v289_v55  ;;  %v1214_v2 = vrot.slane %v4502_v46, 5  ;;  %v302_v11 = vrot.slane %v300_v60, 4 }
  0x20   : > { %v285_v5 = vsel %vm4489_vm4, %v280_v58, %v284_v43  ;;  %v308_v12 = vrot.slane %v306_v61, 5  ;;  %v311_v13 = vshrl.u32 %v4512_v57, 16  ;;  %v314_v21 = vshll.u32 %v4512_v57, 16 }
  0x21   : > { %v3242_v15 = vcombine.low %v275_v63, %v285_v5  ;;  %v294_v17 = vrot.slane %v293_v0, 4  ;;  %v320_v22 = vshll.u32 %v4517_v62, 16  ;;  %v303_v24 = vor.u32 %v302_v11, %v298_v59  ;;  %v4578_v5 = vld [vmem:[%s4442_s25 + $0x44] sm:$0x1] }
  0x22   : > { %v313_v25 = vrot.slane %v311_v13, 4  ;;  %v324_v26 = vshrl.u32 %v4517_v62, 16  ;;  %v330_v27 = vshll.u32 %v4525_v4, 16  ;;  %v316_v30 = vrot.slane %v314_v21, 5  ;;  %v4583_v13 = vld [vmem:[%s4442_s25 + $0x48] sm:$0xf] }
  0x23   : > { %3784 = vmatprep.mubr.msk.bf16.mxu0 %vm670_vm3, %v3242_v15  ;;  %3649 = vmatmul.mubr.msk.bf16.vlgmr.msra.gmra.mrb[0].mxu1 %vm670_vm3, %v3242_v15  ;;  %v299_v29 = vsel %vm4489_vm4, %v294_v17, %v298_v59  ;;  %v322_v31 = vrot.slane %v320_v22, 5  ;;  %v335_v35 = vshrl.u32 %v4531_v14, 16  ;;  %v304_v36 = vrot.slane %v303_v24, 4  ;;  %v4590_v24 = vld [vmem:[%s4442_s25 + $0x4c] sm:$0xf] }
  0x24   : > { %3681 = vmatpush3.bf16.msra.mxu1 %v4445_v6  ;;  %v326_v37 = vrot.slane %v324_v26, 4  ;;  %v332_v40 = vrot.slane %v330_v27, 5  ;;  %v338_v41 = vshll.u32 %v4531_v14, 16  ;;  %v317_v42 = vor.u32 %v316_v30, %v313_v25 }
  0x25   : > { %v337_v43 = vrot.slane %v335_v35, 4  ;;  %v344_v44 = vshll.u32 %v4543_v28, 16  ;;  %v348_v47 = vshrl.u32 %v4543_v28, 16  ;;  %4212 = vmatprep.subr.msk.bf16.mxu1 %vm719_vm0, %v4538_v23  ;;  %v309_v49 = vsel %vm4489_vm4, %v304_v36, %v308_v12 }
  0x26   : > { %v327_v6 = vor.u32 %v326_v37, %v322_v31  ;;  %v340_v50 = vrot.slane %v338_v41, 5  ;;  %v354_v51 = vshll.u32 %v4550_v32, 16  ;;  %v4568_v53 = vcombine.low %v299_v29, %v309_v49 }
  0x27   : > { %v318_v54 = vrot.slane %v317_v42, 4  ;;  %v346_v55 = vrot.slane %v344_v44, 5  ;;  %v350_v56 = vrot.slane %v348_v47, 4  ;;  %v359_v61 = vshrl.u32 %v4558_v48, 16  ;;  %v4612_v42 = vld [vmem:[%s4442_s25 + $0x54] sm:$0xf] }
  0x28   : > { %5728 = vst [vmem:[#allocation3_spill] sm:$0xff] %v4568_v53  ;;  %v328_v58 = vrot.slane %v327_v6, 4  ;;  %v341_v59 = vor.u32 %v340_v50, %v337_v43  ;;  %v356_v60 = vrot.slane %v354_v51, 5  ;;  %3785 = vmatmul.mubr.msk.bf16.vlgmr.msra.gmra.mrb[0].mxu0 %vm670_vm3, %v4568_v53  ;;  %3652 = vmatprep.mubr.msk.bf16.mxu1 %vm670_vm3, %v4568_v53  ;;  %v362_v11 = vshll.u32 %v4558_v48, 16  ;;  %5730 = vst [vmem:[#allocation5_spill] sm:$0xff] %v4612_v42 }
  0x29   : > { %v323_v63 = vsel %vm4489_vm4, %v318_v54, %v322_v31  ;;  %v351_v0 = vor.u32 %v350_v56, %v346_v55  ;;  %v368_v12 = vshll.u32 %v4566_v52, 16  ;;  %3817 = vmatpush3.bf16.msra.mxu0 %v4448_v7  ;;  %v361_v21 = vrot.slane %v359_v61, 4  ;;  %v4617_v6 = vld [vmem:[%s4442_s25 + $0x58] sm:$0xf] }
  0x2a   : > { %v333_v15 = vsel %vm4489_vm4, %v328_v58, %v332_v40  ;;  %v342_v17 = vrot.slane %v341_v59, 4  ;;  %v372_v22 = vshrl.u32 %v4566_v52, 16  ;;  %v364_v27 = vrot.slane %v362_v11, 5  ;;  %4217 = vmatprep.subr.msk.bf16.mxu0 %vm719_vm0, %v4453_v8  ;;  %v4607_v8 = vld [vmem:[%s4442_s25 + $0x50] sm:$0x1] }
  0x2b   : > { %v4592_v25 = vcombine.low %v323_v63, %v333_v15  ;;  %v352_v26 = vrot.slane %v351_v0, 4  ;;  %v370_v29 = vrot.slane %v368_v12, 5  ;;  %v378_v31 = vshll.u32 %v4578_v5, 16  ;;  %v4630_v11 = vld [vmem:[%s4442_s25 + $0x5c] sm:$0x1] }
  0x2c   : > { %v347_v7 = vsel %vm4489_vm4, %v342_v17, %v346_v55  ;;  %v374_v30 = vrot.slane %v372_v22, 4  ;;  %v383_v35 = vshrl.u32 %v4583_v13, 16  ;;  %v365_v37 = vor.u32 %v364_v27, %v361_v21  ;;  %v4634_v15 = vld [vmem:[%s4442_s25 + $0x60] sm:$0xf]  ;;  %v4639_v27 = vld [vmem:[%s4442_s25 + $0x64] sm:$0xf] }
  0x2d   : > { %5729 = vst [vmem:[#allocation4_spill] sm:$0xff] %v4592_v25  ;;  %3788 = vmatprep.mubr.msk.bf16.mxu0 %vm670_vm3, %v4592_v25  ;;  %3653 = vmatmul.mubr.msk.bf16.gmra.mrb[4].mxu1 %vm670_vm3, %v4592_v25  ;;  %v357_v36 = vsel %vm4489_vm4, %v352_v26, %v356_v60  ;;  %v386_v40 = vshll.u32 %v4583_v13, 16  ;;  %v392_v41 = vshll.u32 %v4590_v24, 16  ;;  %v380_v47 = vrot.slane %v378_v31, 5  ;;  %v4851_v25 = vld [vmem:[%s4442_s25 + $0xa8] sm:$0xf] }
  0x2e   : > { %v4614_v43 = vcombine.low %v347_v7, %v357_v36  ;;  %v375_v44 = vor.u32 %v374_v30, %v370_v29  ;;  %v385_v49 = vrot.slane %v383_v35, 4  ;;  %v366_v50 = vrot.slane %v365_v37, 4 }
  0x2f   : > { %v388_v51 = vrot.slane %v386_v40, 5  ;;  %v394_v54 = vrot.slane %v392_v41, 5  ;;  %v396_v55 = vshrl.u32 %v4590_v24, 16  ;;  %v402_v58 = vshll.u32 %v4607_v8, 16 }
  0x30   : > { %5731 = vst [vmem:[#allocation6_spill] sm:$0xff] %v4614_v43  ;;  %3656 = vmatprep.mubr.msk.bf16.mxu1 %vm670_vm3, %v4614_v43  ;;  %v376_v56 = vrot.slane %v375_v44, 4  ;;  %v407_v59 = vshrl.u32 %v4612_v42, 16  ;;  %v410_v60 = vshll.u32 %v4612_v42, 16  ;;  %3789 = vmatmul.mubr.msk.bf16.gmra.mrb[4].mxu0 %vm670_vm3, %v4614_v43  ;;  %v371_v61 = vsel %vm4489_vm4, %v366_v50, %v370_v29 }
  0x31   : > { %v389_v63 = vor.u32 %v388_v51, %v385_v49  ;;  %v398_v0 = vrot.slane %v396_v55, 4  ;;  %v416_v12 = vshll.u32 %v4617_v6, 16  ;;  %v404_v21 = vrot.slane %v402_v58, 5 }
  0x32   : > { %v381_v17 = vsel %vm4489_vm4, %v376_v56, %v380_v47  ;;  %v409_v22 = vrot.slane %v407_v59, 4  ;;  %v412_v26 = vrot.slane %v410_v60, 5  ;;  %v420_v36 = vshrl.u32 %v4617_v6, 16  ;;  %v4653_v47 = vld [vmem:[%s4442_s25 + $0x68] sm:$0x1] }
  0x33   : > { %v4641_v7 = vcombine.low %v371_v61, %v381_v17  ;;  %v390_v29 = vrot.slane %v389_v63, 4  ;;  %v399_v30 = vor.u32 %v398_v0, %v394_v54  ;;  %v418_v31 = vrot.slane %v416_v12, 5 }
  0x34   : > { %v413_v35 = vor.u32 %v412_v26, %v409_v22  ;;  %v426_v37 = vshll.u32 %v4630_v11, 16  ;;  %v431_v40 = vshrl.u32 %v4634_v15, 16  ;;  %v434_v49 = vshll.u32 %v4634_v15, 16 }
  0x35   : > { %5732 = vst [vmem:[#allocation7_spill] sm:$0xff] %v4641_v7  ;;  %3792 = vmatprep.mubr.msk.bf16.mxu0 %vm670_vm3, %v4641_v7  ;;  %3657 = vmatmul.mubr.msk.bf16.gmra.mrb[8].mxu1 %vm670_vm3, %v4641_v7  ;;  %v395_v41 = vsel %vm4489_vm4, %v390_v29, %v394_v54  ;;  %v400_v44 = vrot.slane %v399_v30, 4  ;;  %v440_v50 = vshll.u32 %v4639_v27, 16  ;;  %v422_v55 = vrot.slane %v420_v36, 4  ;;  %v4661_v54 = vld [vmem:[%s4442_s25 + $0x6c] sm:$0xf] }
  0x36   : > { %v414_v51 = vrot.slane %v413_v35, 4  ;;  %v428_v56 = vrot.slane %v426_v37, 5  ;;  %v433_v58 = vrot.slane %v431_v40, 4  ;;  %v436_v60 = vrot.slane %v434_v49, 5  ;;  %v4677_v36 = vld [vmem:[%s4442_s25 + $0x70] sm:$0xf] }
  0x37   : > { %v405_v59 = vsel %vm4489_vm4, %v400_v44, %v404_v21  ;;  %v442_v61 = vrot.slane %v440_v50, 5  ;;  %v444_v63 = vshrl.u32 %v4639_v27, 16  ;;  %v423_v17 = vor.u32 %v422_v55, %v418_v31  ;;  %v4828_v7 = vld [vmem:[%s4442_s25 + $0xa0] sm:$0xf] }
  0x38   : > { %v4663_v0 = vcombine.low %v395_v41, %v405_v59  ;;  %v419_v12 = vsel %vm4489_vm4, %v414_v51, %v418_v31  ;;  %v450_v22 = vshll.u32 %v4653_v47, 16  ;;  %v437_v21 = vor.u32 %v436_v60, %v433_v58  ;;  %v4690_v51 = vld [vmem:[%s4442_s25 + $0x74] sm:$0x1] }
  0x39   : > { %v446_v29 = vrot.slane %v444_v63, 4  ;;  %v3306_v30 = vrot.slane %v4467_v16, 9  ;;  %v1204_v35 = vrot.slane %v4470_v18, 5  ;;  %v424_v31 = vrot.slane %v423_v17, 4 }
  0x3a   : > { %5733 = vst [vmem:[#allocation8_spill] sm:$0xff] %v4663_v0  ;;  %3793 = vmatmul.mubr.msk.bf16.gmra.mrb[8].mxu0 %vm670_vm3, %v4663_v0  ;;  %3660 = vmatprep.mubr.msk.bf16.mxu1 %vm670_vm3, %v4663_v0  ;;  %v452_v37 = vrot.slane %v450_v22, 5  ;;  %v455_v40 = vshrl.u32 %v4661_v54, 16  ;;  %v458_v41 = vshll.u32 %v4661_v54, 16  ;;  %v438_v44 = vrot.slane %v437_v21, 4 }
  0x3b   : > { %v447_v49 = vor.u32 %v446_v29, %v442_v61  ;;  %v1205_v16 = vsel %vm4670_vm7, %v3306_v30, %v1204_v35  ;;  %v1206_v18 = vrot.slane %v1204_v35, 4  ;;  %v429_v50 = vsel %vm4489_vm4, %v424_v31, %v428_v56  ;;  %v4702_v56 = vld [vmem:[%s4442_s25 + $0x78] sm:$0xf]  ;;  %v4718_v31 = vld [vmem:[%s4442_s25 + $0x7c] sm:$0xf] }
  0x3c   : > { %v457_v55 = vrot.slane %v455_v40, 4  ;;  %v460_v58 = vrot.slane %v458_v41, 5  ;;  %v464_v59 = vshll.u32 %v4677_v36, 16  ;;  %v4693_v60 = vcombine.low %v419_v12, %v429_v50 }
  0x3d   : > { %v443_v63 = vsel %vm4489_vm4, %v438_v44, %v442_v61  ;;  %v448_v17 = vrot.slane %v447_v49, 4  ;;  %v1208_v22 = vsel %vm4670_vm7, %v1206_v18, %v1207_v45  ;;  %v468_v35 = vshrl.u32 %v4677_v36, 16  ;;  %v4723_v49 = vld [vmem:[%s4442_s25 + $0x80] sm:$0x1] }
  0x3e   : > { %5736 = vst [vmem:[#allocation9_spill] sm:$0xff] %v4693_v60  ;;  %v4704_v21 = vcombine.low %v1205_v16, %v1208_v22  ;;  %v461_v29 = vor.u32 %v460_v58, %v457_v55  ;;  %v466_v30 = vrot.slane %v464_v59, 5  ;;  %3796 = vmatprep.mubr.msk.bf16.mxu0 %vm670_vm3, %v4693_v60  ;;  %3661 = vmatmul.mubr.msk.bf16.gmra.mrb[12].mxu1 %vm670_vm3, %v4693_v60  ;;  %v474_v45 = vshll.u32 %v4690_v51, 16  ;;  %v4821_v60 = vld [vmem:[%s4442_s25 + $0x9c] sm:$0xf] }
  0x3f   : > { %v453_v19 = vsel %vm4489_vm4, %v448_v17, %v452_v37  ;;  %v3307_v61 = vrot.slane %v4485_v33, 9  ;;  %v1213_v12 = vrot.slane %v1211_v1, 4  ;;  %v470_v44 = vrot.slane %v468_v35, 4 }
  0x40   : > { %5737 = vst [vmem:[#allocation10_spill] sm:$0xff] %v4704_v21  ;;  %v4720_v40 = vcombine.low %v443_v63, %v453_v19  ;;  %v462_v41 = vrot.slane %v461_v29, 4  ;;  %v479_v16 = vshrl.u32 %v4702_v56, 16  ;;  %v476_v18 = vrot.slane %v474_v45, 5  ;;  %v4749_v29 = vld [vmem:[%s4442_s25 + $0x84] sm:$0xf] }
  0x41   : > { %v1212_v37 = vsel %vm4670_vm7, %v3307_v61, %v1211_v1  ;;  %v1215_v50 = vsel %vm4670_vm7, %v1213_v12, %v1214_v2  ;;  %v482_v55 = vshll.u32 %v4702_v56, 16  ;;  %v471_v59 = vor.u32 %v470_v44, %v466_v30 }
  0x42   : > { %5738 = vst [vmem:[#allocation11_spill] sm:$0xff] %v4720_v40  ;;  %3797 = vmatmul.mubr.msk.bf16.gmra.mrb[12].mxu0 %vm670_vm3, %v4720_v40  ;;  %3664 = vmatprep.mubr.msk.bf16.mxu1 %vm670_vm3, %v4720_v40  ;;  %v467_v58 = vsel %vm4489_vm4, %v462_v41, %v466_v30  ;;  %v4741_v63 = vcombine.low %v1212_v37, %v1215_v50  ;;  %v481_v1 = vrot.slane %v479_v16, 4  ;;  %v488_v2 = vshll.u32 %v4718_v31, 16  ;;  %v4755_v16 = vld [vmem:[%s4442_s25 + $0x88] sm:$0xf] }
  0x43   : > { %3818 = vmatprep.mubr.msk.bf16.mxu0 %vm670_vm3, %v4704_v21  ;;  %v484_v46 = vrot.slane %v482_v55, 5  ;;  %v492_v17 = vshrl.u32 %v4718_v31, 16  ;;  %v498_v22 = vshll.u32 %v4723_v49, 16  ;;  %v472_v35 = vrot.slane %v471_v59, 4 }
  0x44   : > { %5739 = vst [vmem:[#allocation12_spill] sm:$0xff] %v4741_v63  ;;  %v3308_v30 = vrot.slane %v4512_v57, 9  ;;  %v1218_v19 = vrot.slane %v4517_v62, 5  ;;  %v1221_v45 = vrot.slane %v4525_v4, 5  ;;  %v490_v12 = vrot.slane %v488_v2, 5 }
  0x45   : > { %v485_v61 = vor.u32 %v484_v46, %v481_v1  ;;  %v494_v41 = vrot.slane %v492_v17, 4  ;;  %v500_v44 = vrot.slane %v498_v22, 5  ;;  %v477_v37 = vsel %vm4489_vm4, %v472_v35, %v476_v18  ;;  %v4765_v1 = vld [vmem:[%s4442_s25 + $0x8c] sm:$0x1] }
  0x46   : > { %v1219_v50 = vsel %vm4670_vm7, %v3308_v30, %v1218_v19  ;;  %v1220_v55 = vrot.slane %v1218_v19, 4  ;;  %v503_v59 = vshrl.u32 %v4749_v29, 16  ;;  %v4762_v3 = vcombine.low %v467_v58, %v477_v37 }
  0x47   : > { %v486_v40 = vrot.slane %v485_v61, 4  ;;  %v495_v4 = vor.u32 %v494_v41, %v490_v12  ;;  %v506_v46 = vshll.u32 %v4749_v29, 16  ;;  %v512_v18 = vshll.u32 %v4755_v16, 16  ;;  %v4779_v61 = vld [vmem:[%s4442_s25 + $0x90] sm:$0xf] }
  0x48   : > { %5740 = vst [vmem:[#allocation13_spill] sm:$0xff] %v4762_v3  ;;  %v1222_v2 = vsel %vm4670_vm7, %v1220_v55, %v1221_v45  ;;  %v505_v17 = vrot.slane %v503_v59, 4  ;;  %v516_v22 = vshrl.u32 %v4755_v16, 16  ;;  %3665 = vmatmul.mubr.msk.bf16.gmra.mrb[16].mxu1 %vm670_vm3, %v4762_v3  ;;  %v4784_v45 = vld [vmem:[%s5691_s1 + $0xe] sm:$0x3]  ;;  %v1225_v59 = vrot.slane %v4543_v28, 5 }
  0x49   : > { %v491_v58 = vsel %vm4489_vm4, %v486_v40, %v490_v12  ;;  %v496_v35 = vrot.slane %v495_v4, 4  ;;  %v4776_v30 = vcombine.low %v1219_v50, %v1222_v2  ;;  %v508_v19 = vrot.slane %v506_v46, 5  ;;  %5742 = vst [vmem:[#allocation15_spill] sm:$0xff] %v4784_v45  ;;  %v4798_v46 = vld [vmem:[%s4442_s25 + $0x94] sm:$0xf] }
  0x4a   : > { %3819 = vmatmul.mubr.msk.bf16.vlgmr.msra.gmra.mrb[0].mxu0 %vm670_vm3, %v4741_v63  ;;  %v514_v41 = vrot.slane %v512_v18, 5  ;;  %v518_v37 = vrot.slane %v516_v22, 4  ;;  %v522_v40 = vshll.u32 %v4765_v1, 16  ;;  %v3309_v12 = vrot.slane %v4531_v14, 9  ;;  %v4803_v3 = vld [vmem:[%s4442_s25 + $0x98] sm:$0x1] }
  0x4b   : > { %5741 = vst [vmem:[#allocation14_spill] sm:$0xff] %v4776_v30  ;;  %3851 = vmatpush3.bf16.msra.mxu0 %v4477_v20  ;;  %v501_v50 = vsel %vm4489_vm4, %v496_v35, %v500_v44  ;;  %3822 = vmatprep.mubr.msk.bf16.mxu0 %vm670_vm3, %v4776_v30  ;;  %v509_v55 = vor.u32 %v508_v19, %v505_v17  ;;  %v1228_v4 = vrot.slane %v4550_v32, 5  ;;  %v527_v20 = vshrl.u32 %v4779_v61, 16 }
  0x4c   : > { %v4800_v2 = vcombine.low %v491_v58, %v501_v50  ;;  %v519_v18 = vor.u32 %v518_v37, %v514_v41  ;;  %v524_v22 = vrot.slane %v522_v40, 5  ;;  %4218 = vmatprep.subr.msk.bf16.mxu0 %vm719_vm0, %v4784_v45  ;;  %v1226_v17 = vsel %vm4670_vm7, %v3309_v12, %v1225_v59 }
  0x4d   : > { %v510_v44 = vrot.slane %v509_v55, 4  ;;  %v1227_v35 = vrot.slane %v1225_v59, 4  ;;  %v530_v32 = vshll.u32 %v4779_v61, 16  ;;  %v529_v19 = vrot.slane %v527_v20, 4 }
  0x4e   : > { %5743 = vst [vmem:[#allocation16_spill] sm:$0xff] %v4800_v2  ;;  %3668 = vmatprep.mubr.msk.bf16.mxu1 %vm670_vm3, %v4800_v2  ;;  %v520_v58 = vrot.slane %v519_v18, 4  ;;  %v536_v37 = vshll.u32 %v4798_v46, 16  ;;  %v540_v40 = vshrl.u32 %v4798_v46, 16  ;;  %v546_v59 = vshll.u32 %v4803_v3, 16 }
  0x4f   : > { %v515_v50 = vsel %vm4489_vm4, %v510_v44, %v514_v41  ;;  %v1229_v55 = vsel %vm4670_vm7, %v1227_v35, %v1228_v4  ;;  %v532_v12 = vrot.slane %v530_v32, 5  ;;  %v3310_v4 = vrot.slane %v4558_v48, 9 }
  0x50   : > { %v525_v2 = vsel %vm4489_vm4, %v520_v58, %v524_v22  ;;  %v4825_v18 = vcombine.low %v1226_v17, %v1229_v55  ;;  %v538_v20 = vrot.slane %v536_v37, 5  ;;  %v542_v0 = vrot.slane %v540_v40, 4  ;;  %v4841_v58 = vld [vmem:[%s4442_s25 + $0xa4] sm:$0x1] }
  0x51   : > { %v4830_v43 = vcombine.low %v515_v50, %v525_v2  ;;  %v533_v41 = vor.u32 %v532_v12, %v529_v19  ;;  %v548_v44 = vrot.slane %v546_v59, 5  ;;  %v1232_v32 = vrot.slane %v4566_v52, 5 }
  0x52   : > { %5744 = vst [vmem:[#allocation17_spill] sm:$0xff] %v4825_v18  ;;  %3823 = vmatmul.mubr.msk.bf16.gmra.mrb[4].mxu0 %vm670_vm3, %v4825_v18  ;;  %v543_v35 = vor.u32 %v542_v0, %v538_v20  ;;  %v1235_v22 = vrot.slane %v4578_v5, 5  ;;  %v551_v17 = vshrl.u32 %v4821_v60, 16  ;;  %v554_v19 = vshll.u32 %v4821_v60, 16 }
  0x53   : > { %5745 = vst [vmem:[#allocation18_spill] sm:$0xff] %v4830_v43  ;;  %3669 = vmatmul.mubr.msk.bf16.gmra.mrb[20].mxu1 %vm670_vm3, %v4830_v43  ;;  %v534_v2 = vrot.slane %v533_v41, 4  ;;  %v560_v37 = vshll.u32 %v4828_v7, 16  ;;  %v564_v0 = vshrl.u32 %v4828_v7, 16  ;;  %v1233_v5 = vsel %vm4670_vm7, %v3310_v4, %v1232_v32 }
  0x54   : > { %v544_v40 = vrot.slane %v543_v35, 4  ;;  %v1234_v50 = vrot.slane %v1232_v32, 4  ;;  %v553_v55 = vrot.slane %v551_v17, 4  ;;  %v556_v59 = vrot.slane %v554_v19, 5  ;;  %v4860_v32 = vld [vmem:[%s4442_s25 + $0xac] sm:$0xf] }
  0x55   : > { %v539_v12 = vsel %vm4489_vm4, %v534_v2, %v538_v20  ;;  %v562_v41 = vrot.slane %v560_v37, 5  ;;  %v566_v43 = vrot.slane %v564_v0, 4  ;;  %v570_v35 = vshll.u32 %v4841_v58, 16 }
  0x56   : > { %v549_v53 = vsel %vm4489_vm4, %v544_v40, %v548_v44  ;;  %v1236_v18 = vsel %vm4670_vm7, %v1234_v50, %v1235_v22  ;;  %v3311_v4 = vrot.slane %v4583_v13, 9  ;;  %v557_v2 = vor.u32 %v556_v59, %v553_v55 }
  0x57   : > { %v4862_v17 = vcombine.low %v539_v12, %v549_v53  ;;  %v4864_v20 = vcombine.low %v1233_v5, %v1236_v18  ;;  %v567_v19 = vor.u32 %v566_v43, %v562_v41  ;;  %v572_v37 = vrot.slane %v570_v35, 5  ;;  %v4874_v18 = vld [vmem:[%s4442_s25 + $0xb0] sm:$0x1] }
  0x58   : > { %v1239_v0 = vrot.slane %v4590_v24, 5  ;;  %v1242_v44 = vrot.slane %v4607_v8, 5  ;;  %v575_v22 = vshrl.u32 %v4851_v25, 16  ;;  %v558_v53 = vrot.slane %v557_v2, 4 }
  0x59   : > { %5746 = vst [vmem:[#allocation19_spill] sm:$0xff] %v4862_v17  ;;  %5747 = vst [vmem:[#allocation20_spill] sm:$0xff] %v4864_v20  ;;  %3672 = vmatprep.mubr.msk.bf16.mxu1 %vm670_vm3, %v4862_v17  ;;  %3826 = vmatprep.mubr.msk.bf16.mxu0 %vm670_vm3, %v4864_v20  ;;  %v568_v40 = vrot.slane %v567_v19, 4  ;;  %v578_v43 = vshll.u32 %v4851_v25, 16  ;;  %v584_v5 = vshll.u32 %v4860_v32, 16  ;;  %v588_v12 = vshrl.u32 %v4860_v32, 16 }
  0x5a   : > { %v1240_v8 = vsel %vm4670_vm7, %v3311_v4, %v1239_v0  ;;  %v1241_v50 = vrot.slane %v1239_v0, 4  ;;  %v577_v55 = vrot.slane %v575_v22, 4  ;;  %v563_v59 = vsel %vm4489_vm4, %v558_v53, %v562_v41  ;;  %v4886_v17 = vld [vmem:[%s4442_s25 + $0xb4] sm:$0xf]  ;;  %v4898_v53 = vld [vmem:[%s4442_s25 + $0xb8] sm:$0xf] }
  0x5b   : > { %v573_v35 = vsel %vm4489_vm4, %v568_v40, %v572_v37  ;;  %v580_v2 = vrot.slane %v578_v43, 5  ;;  %v586_v19 = vrot.slane %v584_v5, 5  ;;  %v590_v0 = vrot.slane %v588_v12, 4 }
  0x5c   : > { %v4888_v20 = vcombine.low %v563_v59, %v573_v35  ;;  %v1243_v4 = vsel %vm4670_vm7, %v1241_v50, %v1242_v44  ;;  %v594_v22 = vshll.u32 %v4874_v18, 16  ;;  %v3312_v41 = vrot.slane %v4612_v42, 9  ;;  %v4904_v44 = vld [vmem:[%s4442_s25 + $0xbc] sm:$0x1] }
  0x5d   : > { %v4893_v30 = vcombine.low %v1240_v8, %v1243_v4  ;;  %v581_v63 = vor.u32 %v580_v2, %v577_v55  ;;  %v1246_v37 = vrot.slane %v4617_v6, 5  ;;  %v591_v40 = vor.u32 %v590_v0, %v586_v19 }
  0x5e   : > { %5748 = vst [vmem:[#allocation21_spill] sm:$0xff] %v4888_v20  ;;  %3673 = vmatmul.mubr.msk.bf16.gmra.mrb[24].mxu1 %vm670_vm3, %v4888_v20  ;;  %v596_v43 = vrot.slane %v594_v22, 5  ;;  %v1249_v5 = vrot.slane %v4630_v11, 5  ;;  %v599_v50 = vshrl.u32 %v4886_v17, 16  ;;  %v602_v59 = vshll.u32 %v4886_v17, 16 }
  0x5f   : > { %5749 = vst [vmem:[#allocation22_spill] sm:$0xff] %v4893_v30  ;;  %3827 = vmatmul.mubr.msk.bf16.gmra.mrb[8].mxu0 %vm670_vm3, %v4893_v30  ;;  %v582_v8 = vrot.slane %v581_v63, 4  ;;  %v1247_v55 = vsel %vm4670_vm7, %v3312_v41, %v1246_v37  ;;  %v1248_v12 = vrot.slane %v1246_v37, 4  ;;  %v592_v35 = vrot.slane %v591_v40, 4 }
  0x60   : > { %v601_v2 = vrot.slane %v599_v50, 4  ;;  %v608_v4 = vshll.u32 %v4898_v53, 16  ;;  %v612_v11 = vshrl.u32 %v4898_v53, 16  ;;  %v604_v20 = vrot.slane %v602_v59, 5 }
  0x61   : > { %v587_v0 = vsel %vm4489_vm4, %v582_v8, %v586_v19  ;;  %v1250_v22 = vsel %vm4670_vm7, %v1248_v12, %v1249_v5  ;;  %v618_v63 = vshll.u32 %v4904_v44, 16  ;;  %v597_v41 = vsel %vm4489_vm4, %v592_v35, %v596_v43 }
  0x62   : > { %v4921_v37 = vcombine.low %v1247_v55, %v1250_v22  ;;  %v610_v40 = vrot.slane %v608_v4, 5  ;;  %v614_v50 = vrot.slane %v612_v11, 4  ;;  %v4923_v30 = vcombine.low %v587_v0, %v597_v41 }
  0x63   : > { %v605_v21 = vor.u32 %v604_v20, %v601_v2  ;;  %v620_v45 = vrot.slane %v618_v63, 5  ;;  %v3313_v42 = vrot.slane %v4634_v15, 9  ;;  %v1253_v5 = vrot.slane %v4639_v27, 5 }
  0x64   : > { %3830 = vmatprep.mubr.msk.bf16.mxu0 %vm670_vm3, %v4921_v37  ;;  %v615_v19 = vor.u32 %v614_v50, %v610_v40  ;;  %v1256_v8 = vrot.slane %v4653_v47, 5  ;;  %v3314_v43 = vrot.slane %v4661_v54, 9  ;;  %3676 = vmatprep.mubr.msk.bf16.mxu1 %vm670_vm3, %v4923_v30  ;;  %v3273_v20 = vcombine.low %v4456_v9, %v4459_v10 }
  0x65   : > { %v606_v55 = vrot.slane %v605_v21, 4  ;;  %v1260_v12 = vrot.slane %v4677_v36, 5  ;;  %v1263_v59 = vrot.slane %v4690_v51, 5  ;;  %v1254_v2 = vsel %vm4670_vm7, %v3313_v42, %v1253_v5 }
  0x66   : > { %v616_v35 = vrot.slane %v615_v19, 4  ;;  %v1255_v4 = vrot.slane %v1253_v5, 4  ;;  %v1267_v47 = vrot.slane %v4718_v31, 5  ;;  %v3315_v9 = vrot.slane %v4702_v56, 9 }
  0x67   : > { %v611_v11 = vsel %vm4489_vm4, %v606_v55, %v610_v40  ;;  %v1261_v21 = vsel %vm4670_vm7, %v3314_v43, %v1260_v12  ;;  %v1262_v0 = vrot.slane %v1260_v12, 4  ;;  %v1270_v42 = vrot.slane %v4723_v49, 5 }
  0x68   : > { %v621_v10 = vsel %vm4489_vm4, %v616_v35, %v620_v45  ;;  %v1257_v51 = vsel %vm4670_vm7, %v1255_v4, %v1256_v8  ;;  %v1269_v22 = vrot.slane %v1267_v47, 4  ;;  %v3316_v19 = vrot.slane %v4749_v29, 9 }
  0x69   : > { %v4950_v63 = vcombine.low %v611_v11, %v621_v10  ;;  %v4952_v41 = vcombine.low %v1254_v2, %v1257_v51  ;;  %v1264_v40 = vsel %vm4670_vm7, %v1262_v0, %v1263_v59  ;;  %v1274_v5 = vrot.slane %v4755_v16, 5 }
  0x6a   : > { %v4956_v50 = vcombine.low %v1261_v21, %v1264_v40  ;;  %v1277_v49 = vrot.slane %v4765_v1, 5  ;;  %v1268_v45 = vsel %vm4670_vm7, %v3315_v9, %v1267_v47  ;;  %v1271_v8 = vsel %vm4670_vm7, %v1269_v22, %v1270_v42 }
  0x6b   : > { %3677 = vmatmul.mubr.msk.bf16.gmra.mrb[28].mxu1 %vm670_vm3, %v4950_v63  ;;  %3831 = vmatmul.mubr.msk.bf16.gmra.mrb[12].mxu0 %vm670_vm3, %v4952_v41  ;;  %v1276_v43 = vrot.slane %v1274_v5, 4  ;;  %v1281_v55 = vrot.slane %v4798_v46, 5  ;;  %v1288_v12 = vrot.slane %v4828_v7, 5  ;;  %v1275_v59 = vsel %vm4670_vm7, %v3316_v19, %v1274_v5 }
  0x6c   : > { %3682 = vmatprep.mubr.msk.bf16.mxu1 %vm670_vm3, %v3273_v20  ;;  %3834 = vmatprep.mubr.msk.bf16.mxu0 %vm670_vm3, %v4956_v50  ;;  %v4978_v20 = vcombine.low %v1268_v45, %v1271_v8  ;;  %v3317_v35 = vrot.slane %v4779_v61, 9  ;;  %v1284_v4 = vrot.slane %v4803_v3, 5  ;;  %v4984_v47 = vcombine.low %v4485_v33, %v4498_v39  ;;  %v4996_v3 = vld [vmem:[%s5691_s1 + $0x6] sm:$0x3] }
  0x6d   : > { %v1278_v1 = vsel %vm4670_vm7, %v1276_v43, %v1277_v49  ;;  %v1283_v2 = vrot.slane %v1281_v55, 4  ;;  %v3318_v11 = vrot.slane %v4821_v60, 9  ;;  %v1404_v21 = vsel %vm719_vm0, %v4538_v23, 0 }
  0x6e   : > { %v4989_v0 = vcombine.low %v1275_v59, %v1278_v1  ;;  %v1290_v9 = vrot.slane %v1288_v12, 4  ;;  %v1291_v10 = vrot.slane %v4841_v58, 5  ;;  %v1295_v51 = vrot.slane %v4860_v32, 5 }
  0x6f   : > { %v1282_v33 = vsel %vm4670_vm7, %v3317_v35, %v1281_v55  ;;  %v1285_v39 = vsel %vm4670_vm7, %v1283_v2, %v1284_v4  ;;  %v5010_v23 = vcombine.low %v4512_v57, %v4517_v62  ;;  %v1289_v58 = vsel %vm4670_vm7, %v3318_v11, %v1288_v12 }
  0x70   : > { %v5016_v22 = vcombine.low %v4634_v15, %v4639_v27  ;;  %v1292_v42 = vsel %vm4670_vm7, %v1290_v9, %v1291_v10  ;;  %v3319_v40 = vrot.slane %v4851_v25, 9  ;;  %v1302_v19 = vrot.slane %v4898_v53, 5 }
  0x71   : > { %v5026_v57 = vcombine.low %v4661_v54, %v4677_v36  ;;  %v5030_v62 = vcombine.low %v1282_v33, %v1285_v39  ;;  %v1297_v15 = vrot.slane %v1295_v51, 4  ;;  %v1298_v27 = vrot.slane %v4874_v18, 5  ;;  %v222_v18 = vld [vmem:[%s4442_s25 + $0xc8] sm:$0x1] }
  0x72   : > { %v5035_v5 = vcombine.low %v4702_v56, %v4718_v31  ;;  %v5039_v49 = vcombine.low %v4749_v29, %v4755_v16  ;;  %v5043_v54 = vcombine.low %v4779_v61, %v4798_v46  ;;  %v5047_v36 = vcombine.low %v4821_v60, %v4828_v7  ;;  %v5066_v61 = vld [vmem:[%s4442_s25 + $0xc4] sm:$0xf] }
  0x73   : > { %3683 = vmatmul.mubr.msk.bf16.vlgmr.msra.gmra.mrb[0].mxu1 %vm670_vm3, %v4495_v38  ;;  %3835 = vmatmul.mubr.msk.bf16.gmra.mrb[16].mxu0 %vm670_vm3, %v4978_v20  ;;  %v5051_v45 = vcombine.low %v4851_v25, %v4860_v32  ;;  %v5055_v56 = vcombine.low %v4531_v14, %v4543_v28  ;;  %v5057_v31 = vcombine.low %v1289_v58, %v1292_v42  ;;  %v3320_v16 = vrot.slane %v4886_v17, 9  ;;  %v5750_v42 = vld [vmem:[#allocation5_spill] sm:$0xff] }
  0x74   : > { %3715 = vmatpush3.bf16.msra.mxu1 %v1404_v21  ;;  %3686 = vmatprep.mubr.msk.bf16.mxu1 %vm670_vm3, %v4984_v47  ;;  %v5061_v29 = vcombine.low %v4886_v17, %v4898_v53  ;;  %v1304_v7 = vrot.slane %v1302_v19, 4  ;;  %v1305_v60 = vrot.slane %v4904_v44, 5  ;;  %v1296_v14 = vsel %vm4670_vm7, %v3319_v40, %v1295_v51  ;;  %v5086_v17 = vld [vmem:[%s4442_s25 + $0xc0] sm:$0xf] }
  0x75   : > { %3838 = vmatprep.mubr.msk.bf16.mxu0 %vm670_vm3, %v4989_v0  ;;  %4213 = vmatprep.subr.msk.bf16.mxu1 %vm719_vm0, %v4996_v3  ;;  %v1299_v28 = vsel %vm4670_vm7, %v1297_v15, %v1298_v27  ;;  %v2032_v25 = vrot.slane %v5066_v61, 5  ;;  %v1303_v46 = vsel %vm4670_vm7, %v3320_v16, %v1302_v19  ;;  %v5091_v53 = vcombine.low %v4558_v48, %v4566_v52 }
  0x76   : > { %v1306_v32 = vsel %vm4670_vm7, %v1304_v7, %v1305_v60  ;;  %v5093_v44 = vcombine.low %v1296_v14, %v1299_v28  ;;  %v5097_v8 = vcombine.low %v4583_v13, %v4590_v24  ;;  %v1804_v43 = vshrl.u32 %v5086_v17, 16  ;;  %v234_v60 = vld [vmem:[%s5691_s1 + $0x10] sm:$0x3]  ;;  %v4375_v14 = vld [vmem:[%s4442_s25 + $0x4] sm:$0xf] }
  0x77   : > { %v1807_v55 = vshll.u32 %v5086_v17, 16  ;;  %v1813_v12 = vshll.u32 %v5066_v61, 16  ;;  %v1817_v59 = vshrl.u32 %v5066_v61, 16  ;;  %v5103_v1 = vcombine.low %v1303_v46, %v1306_v32  ;;  %v4377_v32 = vld [vmem:[%s4442_s25] sm:$0xf] }
  0x78   : > { %v3387_v35 = vrot.slane %v5086_v17, 9  ;;  %v2034_v48 = vrot.slane %v2032_v25, 4  ;;  %v2035_v52 = vrot.slane %v222_v18, 5  ;;  %v1806_v2 = vrot.slane %v1804_v43, 4 }
  0x79   : > { %v1809_v4 = vrot.slane %v1807_v55, 5  ;;  %v1815_v11 = vrot.slane %v1813_v12, 5  ;;  %v1819_v21 = vrot.slane %v1817_v59, 4  ;;  %v1823_v9 = vshll.u32 %v222_v18, 16 }
  0x7a   : > { %v2033_v10 = vsel %vm4670_vm7, %v3387_v35, %v2032_v25  ;;  %v2036_v51 = vsel %vm4670_vm7, %v2034_v48, %v2035_v52  ;;  %v5120_v40 = vcombine.low %v5750_v42, %v4617_v6  ;;  %v5751_v6 = vld [vmem:[#allocation15_spill] sm:$0xff]  ;;  %v1197_v28 = vrot.slane %v4375_v14, 5  ;;  %v5752_v48 = vld [vmem:[#allocation10_spill] sm:$0xff]  ;;  %v5753_v52 = vld [vmem:[#allocation12_spill] sm:$0xff] }
  0x7b   : > { %3687 = vmatmul.mubr.msk.bf16.gmra.mrb[4].mxu1 %vm670_vm3, %v5010_v23  ;;  %3839 = vmatmul.mubr.msk.bf16.gmra.mrb[20].mxu0 %vm670_vm3, %v5030_v62  ;;  %v1810_v13 = vor.u32 %v1809_v4, %v1806_v2  ;;  %v1820_v24 = vor.u32 %v1819_v21, %v1815_v11  ;;  %v1825_v58 = vrot.slane %v1823_v9, 5  ;;  %v5122_v19 = vcombine.low %v2033_v10, %v2036_v51  ;;  %v4376_v25 = vld [vmem:[%s4442_s25 + $0x8] sm:$0x1]  ;;  %v5755_v4 = vld [vmem:[#allocation17_spill] sm:$0xff]  ;;  %v5756_v21 = vld [vmem:[#allocation20_spill] sm:$0xff] }
  0x7c   : > { %3690 = vmatprep.mubr.msk.bf16.mxu1 %vm670_vm3, %v5055_v56  ;;  %3842 = vmatprep.mubr.msk.bf16.mxu0 %vm670_vm3, %v5057_v31  ;;  %v2474_v7 = vsel %vm719_vm0, %v5751_v6, 0  ;;  %v1200_v46 = vrot.slane %v4376_v25, 5  ;;  %v3305_v18 = vrot.slane %v4377_v32, 9  ;;  %v1199_v43 = vrot.slane %v1197_v28, 4  ;;  %v4378_v2 = vld [vmem:[%s5691_s1 + $0x8] sm:$0x3] }
  0x7d   : > { %v1811_v33 = vrot.slane %v1810_v13, 4  ;;  %v1821_v39 = vrot.slane %v1820_v24, 4  ;;  %v1608_v35 = vsel %vm719_vm0, %v4996_v3, 0  ;;  %v5754_v3 = vld [vmem:[#allocation14_spill] sm:$0xff]  ;;  %v5217_v24 = vld [vmem:[%s4442_s25 + $0xcc] sm:$0xf] }
  0x7e   : > { %v1198_v55 = vsel %vm4670_vm7, %v3305_v18, %v1197_v28  ;;  %v1201_v12 = vsel %vm4670_vm7, %v1199_v43, %v1200_v46  ;;  %v5757_v13 = vld [vmem:[#allocation22_spill] sm:$0xff]  ;;  %v5220_v9 = vld [vmem:[%s4442_s25 + $0xd0] sm:$0xf]  ;;  %v2684_v10 = vsel %vm719_vm0, %v234_v60, 0  ;;  %v5763_v42 = vld [vmem:[#allocation9_spill] sm:$0xff]  ;;  %v2447_v14 = vshll.u32 %v5217_v24, 16 }
  0x7f   : > { %v1816_v15 = vsel %vm4489_vm4, %v1811_v33, %v1815_v11  ;;  %v1826_v27 = vsel %vm4489_vm4, %v1821_v39, %v1825_v58  ;;  %v3321_v59 = vcombine.low %v1198_v55, %v1201_v12  ;;  %v5206_v11 = vcombine.low %v5086_v17, %v5066_v61  ;;  %v5758_v17 = vld [vmem:[#allocation3_spill] sm:$0xff]  ;;  %v5759_v51 = vld [vmem:[#allocation4_spill] sm:$0xff]  ;;  %v5760_v33 = vld [vmem:[#allocation6_spill] sm:$0xff] }
  0x80   : > { %v5128_v16 = vcombine.low %v1816_v15, %v1826_v27  ;;  %v3405_v61 = vcombine.low %v5217_v24, %v5220_v9  ;;  %v5761_v39 = vld [vmem:[#allocation7_spill] sm:$0xff]  ;;  %v5762_v58 = vld [vmem:[#allocation8_spill] sm:$0xff]  ;;  %v5765_v27 = vld [vmem:[#allocation13_spill] sm:$0xff]  ;;  %v2457_v28 = vshrl.u32 %v5220_v9, 16  ;;  %v2449_v32 = vrot.slane %v2447_v14, 5 }
  0x81   : > { %v5764_v15 = vld [vmem:[#allocation11_spill] sm:$0xff]  ;;  %v5766_v6 = vld [vmem:[#allocation16_spill] sm:$0xff]  ;;  %v5768_v25 = vld [vmem:[#allocation2_spill] sm:$0xff]  ;;  %v2672_v34 = vrot.slane %v5220_v9, 5 }
  0x82   : > { %v5769_v46 = vld [vmem:[#allocation19_spill] sm:$0xff]  ;;  %v2459_v43 = vrot.slane %v2457_v28, 4  ;;  %v225_v55 = vld [vmem:[%s4442_s25 + $0xd4] sm:$0x1]  ;;  %v5770_v12 = vld [vmem:[#allocation21_spill] sm:$0xff] }
  0x83   : > { %3691 = vmatmul.mubr.msk.bf16.gmra.mrb[8].mxu1 %vm670_vm3, %v5091_v53  ;;  %3843 = vmatmul.mubr.msk.bf16.gmra.mrb[24].mxu0 %vm670_vm3, %v5093_v44 }
  0x84   : > { %3694 = vmatprep.mubr.msk.bf16.mxu1 %vm670_vm3, %v5097_v8  ;;  %3846 = vmatprep.mubr.msk.bf16.mxu0 %vm670_vm3, %v5103_v1 }
  0x8b   : > { %3695 = vmatmul.mubr.msk.bf16.gmra.mrb[12].mxu1 %vm670_vm3, %v5120_v40  ;;  %3847 = vmatmul.mubr.msk.bf16.gmra.mrb[28].mxu0 %vm670_vm3, %v5122_v19 }
  0x8c   : > { %3698 = vmatprep.mubr.msk.bf16.mxu1 %vm670_vm3, %v5016_v22  ;;  %3852 = vmatprep.mubr.msk.bf16.mxu0 %vm670_vm3, %v4984_v47 }
  0x93   : > { %3699 = vmatmul.mubr.msk.bf16.gmra.mrb[16].mxu1 %vm670_vm3, %v5026_v57  ;;  %3853 = vmatmul.mubr.msk.bf16.vlgmr.msra.gmra.mrb[0].mxu0 %vm670_vm3, %v5010_v23 }
  0x94   : > { %3885 = vmatpush3.bf16.msra.mxu0 %v2474_v7  ;;  %3702 = vmatprep.mubr.msk.bf16.mxu1 %vm670_vm3, %v5035_v5  ;;  %v5767_v7 = vld [vmem:[#allocation18_spill] sm:$0xff] }
  0x95   : > { %3856 = vmatprep.mubr.msk.bf16.mxu0 %vm670_vm3, %v5055_v56  ;;  %4219 = vmatprep.subr.msk.bf16.mxu0 %vm719_vm0, %v234_v60  ;;  %v2444_v60 = vshrl.u32 %v5217_v24, 16 }
  0x9b   : > { %3703 = vmatmul.mubr.msk.bf16.gmra.mrb[20].mxu1 %vm670_vm3, %v5039_v49  ;;  %3857 = vmatmul.mubr.msk.bf16.gmra.mrb[4].mxu0 %vm670_vm3, %v5091_v53 }
  0x9c   : > { %3706 = vmatprep.mubr.msk.bf16.mxu1 %vm670_vm3, %v5043_v54  ;;  %3860 = vmatprep.mubr.msk.bf16.mxu0 %vm670_vm3, %v5097_v8 }
  0xa3   : > { %3707 = vmatmul.mubr.msk.bf16.gmra.mrb[24].mxu1 %vm670_vm3, %v5047_v36  ;;  %3861 = vmatmul.mubr.msk.bf16.gmra.mrb[8].mxu0 %vm670_vm3, %v5120_v40 }
  0xa4   : > { %3710 = vmatprep.mubr.msk.bf16.mxu1 %vm670_vm3, %v5051_v45  ;;  %3864 = vmatprep.mubr.msk.bf16.mxu0 %vm670_vm3, %v5016_v22 }
  0xab   : > { %3711 = vmatmul.mubr.msk.bf16.gmra.mrb[28].mxu1 %vm670_vm3, %v5061_v29  ;;  %3865 = vmatmul.mubr.msk.bf16.gmra.mrb[12].mxu0 %vm670_vm3, %v5026_v57 }
  0xac   : > { %3716 = vmatprep.mubr.msk.bf16.mxu1 %vm670_vm3, %v3321_v59  ;;  %3868 = vmatprep.mubr.msk.bf16.mxu0 %vm670_vm3, %v5035_v5 }
  0xb3   : > { %3717 = vmatmul.mubr.msk.bf16.vlgmr.msra.gmra.mrb[0].mxu1 %vm670_vm3, %v5752_v48  ;;  %3869 = vmatmul.mubr.msk.bf16.gmra.mrb[16].mxu0 %vm670_vm3, %v5039_v49 }
  0xb4   : > { %3749 = vmatpush3.bf16.msra.mxu1 %v1608_v35  ;;  %3720 = vmatprep.mubr.msk.bf16.mxu1 %vm670_vm3, %v5753_v52  ;;  %v2463_v35 = vshll.u32 %v225_v55, 16 }
  0xb5   : > { %3872 = vmatprep.mubr.msk.bf16.mxu0 %vm670_vm3, %v5043_v54  ;;  %4215 = vmatprep.subr.msk.bf16.mxu1 %vm719_vm0, %v4378_v2 }
  0xbb   : > { %3721 = vmatmul.mubr.msk.bf16.gmra.mrb[4].mxu1 %vm670_vm3, %v5754_v3  ;;  %3873 = vmatmul.mubr.msk.bf16.gmra.mrb[20].mxu0 %vm670_vm3, %v5047_v36 }
  0xbc   : > { %3724 = vmatprep.mubr.msk.bf16.mxu1 %vm670_vm3, %v5755_v4  ;;  %3876 = vmatprep.mubr.msk.bf16.mxu0 %vm670_vm3, %v5051_v45 }
  0xc3   : > { %3725 = vmatmul.mubr.msk.bf16.gmra.mrb[8].mxu1 %vm670_vm3, %v5756_v21  ;;  %3877 = vmatmul.mubr.msk.bf16.gmra.mrb[24].mxu0 %vm670_vm3, %v5061_v29 }
  0xc4   : > { %3728 = vmatprep.mubr.msk.bf16.mxu1 %vm670_vm3, %v5757_v13  ;;  %3880 = vmatprep.mubr.msk.bf16.mxu0 %vm670_vm3, %v5206_v11 }
  0xcb   : > { %3729 = vmatmul.mubr.msk.bf16.gmra.mrb[12].mxu1 %vm670_vm3, %v4921_v37  ;;  %3881 = vmatmul.mubr.msk.bf16.gmra.mrb[28].mxu0 %vm670_vm3, %v3405_v61  ;;  %v2465_v61 = vrot.slane %v2463_v35, 5 }
  0xcc   : > { %3732 = vmatprep.mubr.msk.bf16.mxu1 %vm670_vm3, %v4952_v41  ;;  %3886 = vmatprep.mubr.msk.bf16.mxu0 %vm670_vm3, %v5758_v17 }
  0xd3   : > { %3733 = vmatmul.mubr.msk.bf16.gmra.mrb[16].mxu1 %vm670_vm3, %v4956_v50  ;;  %3887 = vmatmul.mubr.msk.bf16.vlgmr.msra.gmra.mrb[0].mxu0 %vm670_vm3, %v5759_v51 }
  0xd4   : > { %3919 = vmatpush3.bf16.msra.mxu0 %v2684_v10  ;;  %3736 = vmatprep.mubr.msk.bf16.mxu1 %vm670_vm3, %v4978_v20 }
  0xd5   : > { %3890 = vmatprep.mubr.msk.bf16.mxu0 %vm670_vm3, %v5760_v33 }
  0xdb   : > { %3737 = vmatmul.mubr.msk.bf16.gmra.mrb[20].mxu1 %vm670_vm3, %v4989_v0  ;;  %3891 = vmatmul.mubr.msk.bf16.gmra.mrb[4].mxu0 %vm670_vm3, %v5761_v39 }
  0xdc   : > { %3740 = vmatprep.mubr.msk.bf16.mxu1 %vm670_vm3, %v5030_v62  ;;  %3894 = vmatprep.mubr.msk.bf16.mxu0 %vm670_vm3, %v5762_v58 }
  0xe3   : > { %3741 = vmatmul.mubr.msk.bf16.gmra.mrb[24].mxu1 %vm670_vm3, %v5057_v31  ;;  %3895 = vmatmul.mubr.msk.bf16.gmra.mrb[8].mxu0 %vm670_vm3, %v5763_v42 }
  0xe4   : > { %3744 = vmatprep.mubr.msk.bf16.mxu1 %vm670_vm3, %v5093_v44  ;;  %3898 = vmatprep.mubr.msk.bf16.mxu0 %vm670_vm3, %v5764_v15 }
  0xeb   : > { %3745 = vmatmul.mubr.msk.bf16.gmra.mrb[28].mxu1 %vm670_vm3, %v5103_v1  ;;  %3899 = vmatmul.mubr.msk.bf16.gmra.mrb[12].mxu0 %vm670_vm3, %v5765_v27 }
  0xec   : > { %3750 = vmatprep.mubr.msk.bf16.mxu1 %vm670_vm3, %v4495_v38  ;;  %3902 = vmatprep.mubr.msk.bf16.mxu0 %vm670_vm3, %v5766_v6  ;;  %v2453_v38 = vshll.u32 %v5220_v9, 16 }
  0xee   : > { %v2455_v18 = vrot.slane %v2453_v38, 5 }
  0xf0   : > { %v2460_v59 = vor.u32 %v2459_v43, %v2455_v18 }
  0xf2   : > { %v2461_v2 = vrot.slane %v2460_v59, 4 }
  0xf3   : > { %3751 = vmatmul.mubr.msk.bf16.vlgmr.msra.gmra.mrb[0].mxu1 %vm670_vm3, %v4984_v47  ;;  %3903 = vmatmul.mubr.msk.bf16.gmra.mrb[16].mxu0 %vm670_vm3, %v5767_v7  ;;  %v2446_v47 = vrot.slane %v2444_v60, 4 }
  0xf4   : > { %3953 = vmatpush3.bf16.msra.mxu1 %v5768_v25  ;;  %3754 = vmatprep.mubr.msk.bf16.mxu1 %vm670_vm3, %v5010_v23 }
  0xf5   : > { %3906 = vmatprep.mubr.msk.bf16.mxu0 %vm670_vm3, %v5769_v46  ;;  %v2450_v23 = vor.u32 %v2449_v32, %v2446_v47 }
  0xf7   : > { %v2451_v48 = vrot.slane %v2450_v23, 4 }
  0xfb   : > { %3755 = vmatmul.mubr.msk.bf16.gmra.mrb[4].mxu1 %vm670_vm3, %v5055_v56  ;;  %3907 = vmatmul.mubr.msk.bf16.gmra.mrb[20].mxu0 %vm670_vm3, %v5770_v12  ;;  %v2456_v56 = vsel %vm4489_vm4, %v2451_v48, %v2455_v18 }
  0xfc   : > { %3758 = vmatprep.mubr.msk.bf16.mxu1 %vm670_vm3, %v5091_v53  ;;  %3910 = vmatprep.mubr.msk.bf16.mxu0 %vm670_vm3, %v4923_v30  ;;  %v2466_v53 = vsel %vm4489_vm4, %v2461_v2, %v2465_v61 }
  0xfd   : > { %v3422_v17 = vcombine.low %v2456_v56, %v2466_v53 }
 0x103   : > { %3759 = vmatmul.mubr.msk.bf16.gmra.mrb[8].mxu1 %vm670_vm3, %v5097_v8  ;;  %3911 = vmatmul.mubr.msk.bf16.gmra.mrb[24].mxu0 %vm670_vm3, %v4950_v63 }
 0x104   : > { %3762 = vmatprep.mubr.msk.bf16.mxu1 %vm670_vm3, %v5120_v40  ;;  %3914 = vmatprep.mubr.msk.bf16.mxu0 %vm670_vm3, %v5128_v16 }
 0x10b   : > { %3763 = vmatmul.mubr.msk.bf16.gmra.mrb[12].mxu1 %vm670_vm3, %v5016_v22  ;;  %3915 = vmatmul.mubr.msk.bf16.gmra.mrb[28].mxu0 %vm670_vm3, %v3422_v17 }
 0x10c   : > { %3766 = vmatprep.mubr.msk.bf16.mxu1 %vm670_vm3, %v5026_v57  ;;  %3920 = vmatprep.mubr.msk.bf16.mxu0 %vm670_vm3, %v5753_v52 }
 0x113   : > { %3767 = vmatmul.mubr.msk.bf16.gmra.mrb[16].mxu1 %vm670_vm3, %v5035_v5  ;;  %3921 = vmatmul.mubr.msk.bf16.vlgmr.msra.gmra.mrb[0].mxu0 %vm670_vm3, %v5754_v3 }
 0x114   : > { %3770 = vmatprep.mubr.msk.bf16.mxu1 %vm670_vm3, %v5039_v49  ;;  %3924 = vmatprep.mubr.msk.bf16.mxu0 %vm670_vm3, %v5755_v4 }
 0x11b   : > { %3771 = vmatmul.mubr.msk.bf16.gmra.mrb[20].mxu1 %vm670_vm3, %v5043_v54  ;;  %3925 = vmatmul.mubr.msk.bf16.gmra.mrb[4].mxu0 %vm670_vm3, %v5756_v21 }
 0x11c   : > { %3774 = vmatprep.mubr.msk.bf16.mxu1 %vm670_vm3, %v5047_v36  ;;  %3928 = vmatprep.mubr.msk.bf16.mxu0 %vm670_vm3, %v5757_v13 }
 0x123   : > { %3775 = vmatmul.mubr.msk.bf16.gmra.mrb[24].mxu1 %vm670_vm3, %v5051_v45  ;;  %3929 = vmatmul.mubr.msk.bf16.gmra.mrb[8].mxu0 %vm670_vm3, %v4921_v37  ;;  %v3439_v37 = vrot.slane %v5217_v24, 9 }
 0x124   : > { %3778 = vmatprep.mubr.msk.bf16.mxu1 %vm670_vm3, %v5061_v29  ;;  %3932 = vmatprep.mubr.msk.bf16.mxu0 %vm670_vm3, %v4952_v41  ;;  %v2674_v41 = vrot.slane %v2672_v34, 4 }
 0x12b   : > { %3779 = vmatmul.mubr.msk.bf16.gmra.mrb[28].mxu1 %vm670_vm3, %v5206_v11  ;;  %3933 = vmatmul.mubr.msk.bf16.gmra.mrb[12].mxu0 %vm670_vm3, %v4956_v50  ;;  %v2675_v50 = vrot.slane %v225_v55, 5 }
 0x12c   : > { %3800 = vmatprep.mubr.msk.bf16.mxu1 %vm670_vm3, %v5765_v27  ;;  %3936 = vmatprep.mubr.msk.bf16.mxu0 %vm670_vm3, %v4978_v20  ;;  %v2673_v20 = vsel %vm4670_vm7, %v3439_v37, %v2672_v34 }
 0x133   : > { %3801 = vmatmul.mubr.msk.bf16.vlgmr.msra.gmra.mrb[16].mxu1 %vm670_vm3, %v5766_v6  ;;  %3937 = vmatmul.mubr.msk.bf16.gmra.mrb[16].mxu0 %vm670_vm3, %v4989_v0  ;;  %v2676_v0 = vsel %vm4670_vm7, %v2674_v41, %v2675_v50 }
 0x134   : > { %3804 = vmatprep.mubr.msk.bf16.mxu1 %vm670_vm3, %v5767_v7  ;;  %3940 = vmatprep.mubr.msk.bf16.mxu0 %vm670_vm3, %v5030_v62  ;;  %v3440_v22 = vcombine.low %v2673_v20, %v2676_v0 }
 0x13b   : > { %3805 = vmatmul.mubr.msk.bf16.gmra.mrb[20].mxu1 %vm670_vm3, %v5769_v46  ;;  %3941 = vmatmul.mubr.msk.bf16.gmra.mrb[20].mxu0 %vm670_vm3, %v5057_v31 }
 0x13c   : > { %3808 = vmatprep.mubr.msk.bf16.mxu1 %vm670_vm3, %v5770_v12  ;;  %3944 = vmatprep.mubr.msk.bf16.mxu0 %vm670_vm3, %v5093_v44  ;;  %v2918_v12 = vlaneseq }
 0x13e   : > { %v5417_v41 = vand.u32 127, %v2918_v12 }
 0x140   : > { %vm2920_vm8 = vcmp.ge.s32.totalorder %v5417_v41, 36 }
 0x143   : > { %3809 = vmatmul.mubr.msk.bf16.gmra.mrb[24].mxu1 %vm670_vm3, %v4923_v30  ;;  %3945 = vmatmul.mubr.msk.bf16.gmra.mrb[24].mxu0 %vm670_vm3, %v5103_v1 }
 0x144   : > { %3812 = vmatprep.mubr.msk.bf16.mxu1 %vm670_vm3, %v4950_v63  ;;  %3948 = vmatprep.mubr.msk.bf16.mxu0 %vm670_vm3, %v5122_v19 }
 0x14b   : > { %3813 = vmatmul.mubr.msk.bf16.gmra.mrb[28].mxu1 %vm670_vm3, %v5128_v16  ;;  %3949 = vmatmul.mubr.msk.bf16.gmra.mrb[28].mxu0 %vm670_vm3, %v3440_v22  ;;  %v5383_v16 = vld [vmem:[%s5692_s2] ss:$0 sm:$0xff] }
 0x1c6   : > { %v3752_v30 = vpop.f32.mrb[0].mxu1 }
 0x1c7   : > { %v1644_v57 = vpop.f32.mrb[1].mxu1 }
 0x1c8   : > { %v3753_v62 = vpop.f32.mrb[2].mxu1 }
 0x1c9   : > { %v1647_v5 = vpop.f32.mrb[3].mxu1 }
 0x1ce   : > { %v3756_v63 = vpop.f32.mrb[4].mxu1 }
 0x1cf   : > { %v1660_v49 = vpop.f32.mrb[5].mxu1 }
 0x1d0   : > { %v3757_v54 = vpop.f32.mrb[6].mxu1 }
 0x1d1   : > { %v1663_v36 = vpop.f32.mrb[7].mxu1 }
 0x1d6   : > { %v3760_v45 = vpop.f32.mrb[8].mxu1 }
 0x1d7   : > { %v1676_v31 = vpop.f32.mrb[9].mxu1 }
 0x1d8   : > { %v3761_v29 = vpop.f32.mrb[10].mxu1 }
 0x1d9   : > { %v5370_v44 = vpop.f32.mrb[11].mxu1 }
 0x1de   : > { %v5372_v26 = vpop.f32.mrb[12].mxu1 }
 0x1df   : > { %v5374_v8 = vpop.f32.mrb[13].mxu1 }
 0x1e0   : > { %v5376_v1 = vpop.f32.mrb[14].mxu1 }
 0x1e1   : > { %v5378_v40 = vpop.f32.mrb[15].mxu1 }
 0x1e6   : > { %v3922_v19 = vpop.f32.mrb[0].mxu0 }
 0x1e7   : > { %v3954_v52 = vadd.f32 %v3922_v19, %v3752_v30  ;;  %v2720_v3 = vpop.f32.mrb[1].mxu0 }
 0x1e8   : > { %v3955_v4 = vadd.f32 %v2720_v3, %v1644_v57  ;;  %v3923_v11 = vpop.f32.mrb[2].mxu0 }
 0x1e9   : > { %v5386_v21 = vadd.f32 %v3954_v52, %v5383_v16  ;;  %v3956_v13 = vadd.f32 %v3923_v11, %v3753_v62  ;;  %v2723_v24 = vpop.f32.mrb[3].mxu0 }
 0x1ea   : > { %v5389_v9 = vadd.f32 %v3955_v4, %v5383_v16  ;;  %v3957_v10 = vadd.f32 %v2723_v24, %v1647_v5 }
 0x1eb   : > { %v3460_v51 = vmul.f32 -1.442695, %v5386_v21  ;;  %v5393_v33 = vadd.f32 %v3956_v13, %v5383_v16 }
 0x1ec   : > { %v3458_v39 = vmul.f32 -1.442695, %v5389_v9  ;;  %v5397_v58 = vadd.f32 %v3957_v10, %v5383_v16 }
 0x1ed   : > { %4247 = vpow2.f32 %v3460_v51  ;;  %v3461_v42 = vmul.f32 -1.442695, %v5393_v33 }
 0x1ee   : > { %4249 = vpow2.f32 %v3458_v39  ;;  %v3459_v15 = vmul.f32 -1.442695, %v5397_v58  ;;  %v3926_v27 = vpop.f32.mrb[4].mxu0 }
 0x1ef   : > { %4251 = vpow2.f32 %v3461_v42  ;;  %v3958_v6 = vadd.f32 %v3926_v27, %v3756_v63  ;;  %v2736_v7 = vpop.f32.mrb[5].mxu0 }
 0x1f0   : > { %4253 = vpow2.f32 %v3459_v15  ;;  %v3959_v60 = vadd.f32 %v2736_v7, %v1660_v49  ;;  %v3927_v14 = vpop.f32.mrb[6].mxu0 }
 0x1f1   : > { %v5402_v28 = vadd.f32 %v3958_v6, %v5383_v16  ;;  %v3960_v25 = vadd.f32 %v3927_v14, %v3757_v54  ;;  %v2739_v38 = vpop.f32.mrb[7].mxu0 }
 0x1f2   : > { %v5405_v46 = vadd.f32 %v3959_v60, %v5383_v16  ;;  %v3961_v47 = vadd.f32 %v2739_v38, %v1663_v36 }
 0x1f3   : > { %v3464_v32 = vmul.f32 -1.442695, %v5402_v28  ;;  %v5409_v18 = vadd.f32 %v3960_v25, %v5383_v16 }
 0x1f4   : > { %v3462_v43 = vmul.f32 -1.442695, %v5405_v46  ;;  %v5413_v55 = vadd.f32 %v3961_v47, %v5383_v16 }
 0x1f5   : > { %4255 = vpow2.f32 %v3464_v32  ;;  %v3465_v23 = vmul.f32 -1.442695, %v5409_v18 }
 0x1f6   : > { %4257 = vpow2.f32 %v3462_v43  ;;  %v3463_v59 = vmul.f32 -1.442695, %v5413_v55  ;;  %v3930_v35 = vpop.f32.mrb[8].mxu0 }
 0x1f7   : > { %v4248_v48 = vpop.eup %4247  ;;  %4259 = vpow2.f32 %v3465_v23  ;;  %v3962_v2 = vadd.f32 %v3930_v35, %v3760_v45  ;;  %v2752_v61 = vpop.f32.mrb[9].mxu0 }
 0x1f8   : > { %v4250_v56 = vpop.eup %4249  ;;  %v3019_v53 = vadd.f32 1.0, %v4248_v48  ;;  %4261 = vpow2.f32 %v3463_v59  ;;  %v3963_v17 = vadd.f32 %v2752_v61, %v1676_v31  ;;  %v3931_v34 = vpop.f32.mrb[10].mxu0 }
 0x1f9   : > { %v4252_v37 = vpop.eup %4251  ;;  %v3017_v50 = vadd.f32 1.0, %v4250_v56  ;;  %v5420_v20 = vadd.f32 %v3962_v2, %v5383_v16  ;;  %v3964_v0 = vadd.f32 %v3931_v34, %v3761_v29  ;;  %v2755_v22 = vpop.f32.mrb[11].mxu0 }
 0x1fa   : > { %v4254_v30 = vpop.eup %4253  ;;  %4263 = vrcp.f32 %v3019_v53  ;;  %v3020_v57 = vadd.f32 1.0, %v4252_v37  ;;  %v5423_v62 = vadd.f32 %v3963_v17, %v5383_v16  ;;  %v3965_v5 = vadd.f32 %v2755_v22, %v5370_v44 }
 0x1fb   : > { %4265 = vrcp.f32 %v3017_v50  ;;  %v3018_v63 = vadd.f32 1.0, %v4254_v30  ;;  %v3468_v49 = vmul.f32 -1.442695, %v5420_v20  ;;  %v5428_v54 = vadd.f32 %v3964_v0, %v5383_v16 }
 0x1fc   : > { %4267 = vrcp.f32 %v3020_v57  ;;  %v3466_v36 = vmul.f32 -1.442695, %v5423_v62  ;;  %v5432_v45 = vadd.f32 %v3965_v5, %v5383_v16 }
 0x1fd   : > { %4269 = vrcp.f32 %v3018_v63  ;;  %v3469_v31 = vmul.f32 -1.442695, %v5428_v54 }
 0x1fe   : > { %4271 = vpow2.f32 %v3468_v49  ;;  %v3467_v29 = vmul.f32 -1.442695, %v5432_v45  ;;  %v3934_v44 = vpop.f32.mrb[12].mxu0 }
 0x1ff   : > { %v4256_v19 = vpop.eup %4255  ;;  %4273 = vpow2.f32 %v3466_v36  ;;  %v3966_v52 = vadd.f32 %v3934_v44, %v5372_v26  ;;  %v2768_v3 = vpop.f32.mrb[13].mxu0 }
 0x200   : > { %v4258_v4 = vpop.eup %4257  ;;  %v3023_v11 = vadd.f32 1.0, %v4256_v19  ;;  %4275 = vpow2.f32 %v3469_v31  ;;  %v3967_v13 = vadd.f32 %v2768_v3, %v5374_v8  ;;  %v3935_v24 = vpop.f32.mrb[14].mxu0 }
 0x201   : > { %v4260_v10 = vpop.eup %4259  ;;  %v3021_v51 = vadd.f32 1.0, %v4258_v4  ;;  %4277 = vpow2.f32 %v3467_v29  ;;  %v5441_v39 = vadd.f32 %v3966_v52, %v5383_v16  ;;  %v3968_v42 = vadd.f32 %v3935_v24, %v5376_v1  ;;  %v2771_v15 = vpop.f32.mrb[15].mxu0 }
 0x202   : > { %v4262_v27 = vpop.eup %4261  ;;  %4279 = vrcp.f32 %v3023_v11  ;;  %v3024_v26 = vadd.f32 1.0, %v4260_v10  ;;  %v5445_v6 = vadd.f32 %v3967_v13, %v5383_v16  ;;  %v3969_v7 = vadd.f32 %v2771_v15, %v5378_v40 }
 0x203   : > { %4281 = vrcp.f32 %v3021_v51  ;;  %v3022_v8 = vadd.f32 1.0, %v4262_v27  ;;  %v3472_v60 = vmul.f32 -1.442695, %v5441_v39  ;;  %v5455_v1 = vadd.f32 %v3968_v42, %v5383_v16 }
 0x204   : > { %v4264_v14 = vpop.eup %4263  ;;  %4283 = vrcp.f32 %v3024_v26  ;;  %v3470_v25 = vmul.f32 -1.442695, %v5445_v6  ;;  %v5459_v40 = vadd.f32 %v3969_v7, %v5383_v16 }
 0x205   : > { %v4266_v38 = vpop.eup %4265  ;;  %v3115_v47 = vsel %vm2920_vm8, %v4264_v14, %v5386_v21  ;;  %4285 = vrcp.f32 %v3022_v8  ;;  %v3473_v32 = vmul.f32 -1.442695, %v5455_v1 }
 0x206   : > { %v4268_v43 = vpop.eup %4267  ;;  %3148 = vst.msk [vmem:[%s5451_s17 + $0x10] sm:$0xff] %vm3145_vm9, %v3115_v47  ;;  %v3113_v12 = vsel %vm2920_vm8, %v4266_v38, %v5389_v9  ;;  %4287 = vpow2.f32 %v3472_v60  ;;  %v3471_v23 = vmul.f32 -1.442695, %v5459_v40  ;;  %v3802_v59 = vpop.f32.mrb[16].mxu1 }
 0x207   : > { %v3938_v35 = vpop.f32.mrb[16].mxu0  ;;  %v4270_v48 = vpop.eup %4269  ;;  %3146 = vst.msk [vmem:[%s5451_s17] sm:$0xff] %vm3145_vm9, %v3113_v12  ;;  %v3116_v21 = vsel %vm2920_vm8, %v4268_v43, %v5393_v33  ;;  %4289 = vpow2.f32 %v3470_v25 }
 0x208   : > { %v3970_v2 = vadd.f32 %v3938_v35, %v3802_v59  ;;  %v1934_v61 = vpop.f32.mrb[17].mxu1  ;;  %v2784_v56 = vpop.f32.mrb[17].mxu0  ;;  %3149 = vst.msk [vmem:[%s5451_s17 + $0x18] sm:$0xff] %vm3145_vm9, %v3116_v21  ;;  %v3114_v9 = vsel %vm2920_vm8, %v4270_v48, %v5397_v58  ;;  %4291 = vpow2.f32 %v3473_v32 }
 0x209   : > { %v4272_v53 = vpop.eup %4271  ;;  %v3971_v17 = vadd.f32 %v2784_v56, %v1934_v61  ;;  %v3803_v34 = vpop.f32.mrb[18].mxu1  ;;  %3147 = vst.msk [vmem:[%s5451_s17 + $0x8] sm:$0xff] %vm3145_vm9, %v3114_v9  ;;  %4293 = vpow2.f32 %v3471_v23 }
 0x20a   : > { %v3939_v37 = vpop.f32.mrb[18].mxu0  ;;  %v4274_v50 = vpop.eup %4273  ;;  %v3027_v0 = vadd.f32 1.0, %v4272_v53  ;;  %v5484_v33 = vadd.f32 %v3970_v2, %v5383_v16 }
 0x20b   : > { %v3972_v22 = vadd.f32 %v3939_v37, %v3803_v34  ;;  %v1937_v30 = vpop.f32.mrb[19].mxu1  ;;  %v2787_v57 = vpop.f32.mrb[19].mxu0  ;;  %v3025_v63 = vadd.f32 1.0, %v4274_v50  ;;  %v5487_v49 = vadd.f32 %v3971_v17, %v5383_v16 }
 0x20c   : > { %v4276_v5 = vpop.eup %4275  ;;  %v3973_v58 = vadd.f32 %v2787_v57, %v1937_v30  ;;  %4295 = vrcp.f32 %v3027_v0  ;;  %v3476_v29 = vmul.f32 -1.442695, %v5484_v33 }
 0x20d   : > { %v4278_v36 = vpop.eup %4277  ;;  %v3028_v31 = vadd.f32 1.0, %v4276_v5  ;;  %v5491_v44 = vadd.f32 %v3972_v22, %v5383_v16  ;;  %4297 = vrcp.f32 %v3025_v63  ;;  %v3474_v3 = vmul.f32 -1.442695, %v5487_v49 }
 0x20e   : > { %v4280_v19 = vpop.eup %4279  ;;  %v3026_v52 = vadd.f32 1.0, %v4278_v36  ;;  %v5495_v4 = vadd.f32 %v3973_v58, %v5383_v16  ;;  %v3806_v15 = vpop.f32.mrb[20].mxu1 }
 0x20f   : > { %v4282_v11 = vpop.eup %4281  ;;  %v3119_v13 = vsel %vm2920_vm8, %v4280_v19, %v5402_v28  ;;  %4299 = vrcp.f32 %v3028_v31  ;;  %v3477_v24 = vmul.f32 -1.442695, %v5491_v44  ;;  %v3942_v27 = vpop.f32.mrb[20].mxu0 }
 0x210   : > { %v4284_v10 = vpop.eup %4283  ;;  %3152 = vst.msk [vmem:[%s5451_s17 + $0x30] sm:$0xff] %vm3145_vm9, %v3119_v13  ;;  %v3117_v51 = vsel %vm2920_vm8, %v4282_v11, %v5405_v46  ;;  %4301 = vrcp.f32 %v3026_v52  ;;  %v3475_v42 = vmul.f32 -1.442695, %v5495_v4  ;;  %v3974_v7 = vadd.f32 %v3942_v27, %v3806_v15  ;;  %v1950_v8 = vpop.f32.mrb[21].mxu1 }
 0x211   : > { %v4286_v26 = vpop.eup %4285  ;;  %3150 = vst.msk [vmem:[%s5451_s17 + $0x20] sm:$0xff] %vm3145_vm9, %v3117_v51  ;;  %v3120_v28 = vsel %vm2920_vm8, %v4284_v10, %v5409_v18  ;;  %4303 = vpow2.f32 %v3476_v29  ;;  %v2800_v60 = vpop.f32.mrb[21].mxu0 }
 0x212   : > { %v4288_v14 = vpop.eup %4287  ;;  %3153 = vst.msk [vmem:[%s5451_s17 + $0x38] sm:$0xff] %vm3145_vm9, %v3120_v28  ;;  %v3118_v46 = vsel %vm2920_vm8, %v4286_v26, %v5413_v55  ;;  %4305 = vpow2.f32 %v3474_v3  ;;  %v3975_v25 = vadd.f32 %v2800_v60, %v1950_v8  ;;  %v3807_v38 = vpop.f32.mrb[22].mxu1  ;;  %v5520_v18 = vadd.f32 %v3974_v7, %v5383_v16 }
 0x213   : > { %v3943_v47 = vpop.f32.mrb[22].mxu0  ;;  %v4290_v32 = vpop.eup %4289  ;;  %3151 = vst.msk [vmem:[%s5451_s17 + $0x28] sm:$0xff] %vm3145_vm9, %v3118_v46  ;;  %v3031_v43 = vadd.f32 1.0, %v4288_v14  ;;  %4307 = vpow2.f32 %v3477_v24 }
 0x214   : > { %v3976_v12 = vadd.f32 %v3943_v47, %v3807_v38  ;;  %v1953_v23 = vpop.f32.mrb[23].mxu1  ;;  %v2803_v59 = vpop.f32.mrb[23].mxu0  ;;  %v3029_v48 = vadd.f32 1.0, %v4290_v32  ;;  %4309 = vpow2.f32 %v3475_v42  ;;  %v5523_v55 = vadd.f32 %v3975_v25, %v5383_v16 }
 0x215   : > { %v4292_v35 = vpop.eup %4291  ;;  %v3977_v21 = vadd.f32 %v2803_v59, %v1953_v23  ;;  %4311 = vrcp.f32 %v3031_v43  ;;  %v3480_v56 = vmul.f32 -1.442695, %v5520_v18 }
 0x216   : > { %v4294_v2 = vpop.eup %4293  ;;  %v3032_v61 = vadd.f32 1.0, %v4292_v35  ;;  %v5527_v53 = vadd.f32 %v3976_v12, %v5383_v16  ;;  %4313 = vrcp.f32 %v3029_v48  ;;  %v3478_v17 = vmul.f32 -1.442695, %v5523_v55  ;;  %v3810_v57 = vpop.f32.mrb[24].mxu1 }
 0x217   : > { %v3030_v9 = vadd.f32 1.0, %v4294_v2  ;;  %v5531_v34 = vadd.f32 %v3977_v21, %v5383_v16  ;;  %v4296_v37 = vpop.eup %4295  ;;  %v3946_v5 = vpop.f32.mrb[24].mxu0 }
 0x218   : > { %4315 = vrcp.f32 %v3032_v61  ;;  %v3481_v50 = vmul.f32 -1.442695, %v5527_v53  ;;  %v4298_v0 = vpop.eup %4297  ;;  %v3123_v22 = vsel %vm2920_vm8, %v4296_v37, %v5420_v20  ;;  %v3978_v36 = vadd.f32 %v3946_v5, %v3810_v57  ;;  %v1966_v31 = vpop.f32.mrb[25].mxu1 }
 0x219   : > { %4317 = vrcp.f32 %v3030_v9  ;;  %v3479_v30 = vmul.f32 -1.442695, %v5531_v34  ;;  %v4300_v63 = vpop.eup %4299  ;;  %3156 = vst.msk [vmem:[%s5451_s17 + $0x50] sm:$0xff] %vm3145_vm9, %v3123_v22  ;;  %v3121_v58 = vsel %vm2920_vm8, %v4298_v0, %v5423_v62  ;;  %v2816_v29 = vpop.f32.mrb[25].mxu0 }
 0x21a   : > { %4319 = vpow2.f32 %v3480_v56  ;;  %v4302_v19 = vpop.eup %4301  ;;  %3154 = vst.msk [vmem:[%s5451_s17 + $0x40] sm:$0xff] %vm3145_vm9, %v3121_v58  ;;  %v3124_v20 = vsel %vm2920_vm8, %v4300_v63, %v5428_v54  ;;  %v3979_v52 = vadd.f32 %v2816_v29, %v1966_v31  ;;  %v3811_v3 = vpop.f32.mrb[26].mxu1  ;;  %v5554_v24 = vadd.f32 %v3978_v36, %v5383_v16 }
 0x21b   : > { %4321 = vpow2.f32 %v3478_v17  ;;  %v3947_v11 = vpop.f32.mrb[26].mxu0  ;;  %v4304_v13 = vpop.eup %4303  ;;  %3157 = vst.msk [vmem:[%s5451_s17 + $0x58] sm:$0xff] %vm3145_vm9, %v3124_v20  ;;  %v3122_v62 = vsel %vm2920_vm8, %v4302_v19, %v5432_v45 }
 0x21c   : > { %4323 = vpow2.f32 %v3481_v50  ;;  %v3980_v10 = vadd.f32 %v3947_v11, %v3811_v3  ;;  %v1969_v51 = vpop.f32.mrb[27].mxu1  ;;  %v2819_v42 = vpop.f32.mrb[27].mxu0  ;;  %3155 = vst.msk [vmem:[%s5451_s17 + $0x48] sm:$0xff] %vm3145_vm9, %v3122_v62  ;;  %v3035_v54 = vadd.f32 1.0, %v4304_v13  ;;  %v5559_v27 = vadd.f32 %v3979_v52, %v5383_v16 }
 0x21d   : > { %v4306_v15 = vpop.eup %4305  ;;  %4325 = vpow2.f32 %v3479_v30  ;;  %v3981_v26 = vadd.f32 %v2819_v42, %v1969_v51  ;;  %v3484_v14 = vmul.f32 -1.442695, %v5554_v24 }
 0x21e   : > { %v4308_v28 = vpop.eup %4307  ;;  %v3033_v7 = vadd.f32 1.0, %v4306_v15  ;;  %v5562_v45 = vadd.f32 %v3980_v10, %v5383_v16  ;;  %4327 = vrcp.f32 %v3035_v54  ;;  %v3482_v47 = vmul.f32 -1.442695, %v5559_v27  ;;  %v3814_v23 = vpop.f32.mrb[28].mxu1 }
 0x21f   : > { %v4310_v8 = vpop.eup %4309  ;;  %v3036_v60 = vadd.f32 1.0, %v4308_v28  ;;  %v5566_v46 = vadd.f32 %v3981_v26, %v5383_v16  ;;  %v3950_v59 = vpop.f32.mrb[28].mxu0 }
 0x220   : > { %v4312_v25 = vpop.eup %4311  ;;  %4329 = vrcp.f32 %v3033_v7  ;;  %v3034_v38 = vadd.f32 1.0, %v4310_v8  ;;  %v3485_v12 = vmul.f32 -1.442695, %v5562_v45  ;;  %v3982_v2 = vadd.f32 %v3950_v59, %v3814_v23  ;;  %v1982_v61 = vpop.f32.mrb[29].mxu1 }
 0x221   : > { %v4314_v32 = vpop.eup %4313  ;;  %v3127_v43 = vsel %vm2920_vm8, %v4312_v25, %v5441_v39  ;;  %4331 = vrcp.f32 %v3036_v60  ;;  %v3483_v21 = vmul.f32 -1.442695, %v5566_v46  ;;  %v2832_v56 = vpop.f32.mrb[29].mxu0 }
 0x222   : > { %v4316_v35 = vpop.eup %4315  ;;  %3160 = vst.msk [vmem:[%s5451_s17 + $0x70] sm:$0xff] %vm3145_vm9, %v3127_v43  ;;  %v3125_v48 = vsel %vm2920_vm8, %v4314_v32, %v5445_v6  ;;  %4333 = vrcp.f32 %v3034_v38  ;;  %v3983_v17 = vadd.f32 %v2832_v56, %v1982_v61  ;;  %v3815_v37 = vpop.f32.mrb[30].mxu1  ;;  %v5590_v22 = vadd.f32 %v3982_v2, %v5383_v16 }
 0x223   : > { %v4318_v39 = vpop.eup %4317  ;;  %3158 = vst.msk [vmem:[%s5451_s17 + $0x60] sm:$0xff] %vm3145_vm9, %v3125_v48  ;;  %v3128_v9 = vsel %vm2920_vm8, %v4316_v35, %v5455_v1  ;;  %4335 = vpow2.f32 %v3484_v14  ;;  %v3951_v50 = vpop.f32.mrb[30].mxu0 }
 0x224   : > { %v4320_v0 = vpop.eup %4319  ;;  %3161 = vst.msk [vmem:[%s5451_s17 + $0x78] sm:$0xff] %vm3145_vm9, %v3128_v9  ;;  %v3126_v6 = vsel %vm2920_vm8, %v4318_v39, %v5459_v40  ;;  %4337 = vpow2.f32 %v3482_v47  ;;  %v3984_v30 = vadd.f32 %v3951_v50, %v3815_v37  ;;  %v1985_v57 = vpop.f32.mrb[31].mxu1  ;;  %v5595_v58 = vadd.f32 %v3983_v17, %v5383_v16 }
 0x225   : > { %v2835_v5 = vpop.f32.mrb[31].mxu0  ;;  %v4322_v63 = vpop.eup %4321  ;;  %3159 = vst.msk [vmem:[%s5451_s17 + $0x68] sm:$0xff] %vm3145_vm9, %v3126_v6  ;;  %v3039_v1 = vadd.f32 1.0, %v4320_v0  ;;  %4339 = vpow2.f32 %v3485_v12  ;;  %v3488_v52 = vmul.f32 -1.442695, %v5590_v22 }
 0x226   : > { %v3985_v36 = vadd.f32 %v2835_v5, %v1985_v57  ;;  %v4324_v31 = vpop.eup %4323  ;;  %v3037_v29 = vadd.f32 1.0, %v4322_v63  ;;  %4341 = vpow2.f32 %v3483_v21  ;;  %v5598_v40 = vadd.f32 %v3984_v30, %v5383_v16 }
 0x227   : > { %v4326_v19 = vpop.eup %4325  ;;  %4343 = vrcp.f32 %v3039_v1  ;;  %v3040_v20 = vadd.f32 1.0, %v4324_v31  ;;  %v3486_v13 = vmul.f32 -1.442695, %v5595_v58 }
 0x228   : > { %v5602_v3 = vadd.f32 %v3985_v36, %v5383_v16  ;;  %4345 = vrcp.f32 %v3037_v29  ;;  %v3038_v11 = vadd.f32 1.0, %v4326_v19  ;;  %v4328_v62 = vpop.eup %4327  ;;  %v3489_v10 = vmul.f32 -1.442695, %v5598_v40 }
 0x229   : > { %4347 = vrcp.f32 %v3040_v20  ;;  %v3131_v42 = vsel %vm2920_vm8, %v4328_v62, %v5484_v33 }
 0x22a   : > { %v4330_v51 = vpop.eup %4329  ;;  %4349 = vrcp.f32 %v3038_v11  ;;  %v3487_v16 = vmul.f32 -1.442695, %v5602_v3  ;;  %3164 = vst.msk [vmem:[%s5451_s17 + $0x90] sm:$0xff] %vm3145_vm9, %v3131_v42 }
 0x22b   : > { %v4332_v15 = vpop.eup %4331  ;;  %v3129_v54 = vsel %vm2920_vm8, %v4330_v51, %v5487_v49  ;;  %4351 = vpow2.f32 %v3488_v52 }
 0x22c   : > { %v4334_v26 = vpop.eup %4333  ;;  %3162 = vst.msk [vmem:[%s5451_s17 + $0x80] sm:$0xff] %vm3145_vm9, %v3129_v54  ;;  %v3132_v28 = vsel %vm2920_vm8, %v4332_v15, %v5491_v44  ;;  %4353 = vpow2.f32 %v3486_v13 }
 0x22d   : > { %v4336_v33 = vpop.eup %4335  ;;  %3165 = vst.msk [vmem:[%s5451_s17 + $0x98] sm:$0xff] %vm3145_vm9, %v3132_v28  ;;  %v3130_v7 = vsel %vm2920_vm8, %v4334_v26, %v5495_v4  ;;  %4355 = vpow2.f32 %v3489_v10 }
 0x22e   : > { %v4338_v8 = vpop.eup %4337  ;;  %3163 = vst.msk [vmem:[%s5451_s17 + $0x88] sm:$0xff] %vm3145_vm9, %v3130_v7  ;;  %v3043_v49 = vadd.f32 1.0, %v4336_v33  ;;  %4357 = vpow2.f32 %v3487_v16 }
 0x22f   : > { %v4340_v60 = vpop.eup %4339  ;;  %v3041_v14 = vadd.f32 1.0, %v4338_v8 }
 0x230   : > { %v4342_v25 = vpop.eup %4341  ;;  %4359 = vrcp.f32 %v3043_v49  ;;  %v3044_v44 = vadd.f32 1.0, %v4340_v60 }
 0x231   : > { %v4344_v38 = vpop.eup %4343  ;;  %4361 = vrcp.f32 %v3041_v14  ;;  %v3042_v47 = vadd.f32 1.0, %v4342_v25 }
 0x232   : > { %v4346_v32 = vpop.eup %4345  ;;  %v3135_v4 = vsel %vm2920_vm8, %v4344_v38, %v5520_v18  ;;  %4363 = vrcp.f32 %v3044_v44 }
 0x233   : > { %v4348_v43 = vpop.eup %4347  ;;  %3168 = vst.msk [vmem:[%s5451_s17 + $0xb0] sm:$0xff] %vm3145_vm9, %v3135_v4  ;;  %v3133_v12 = vsel %vm2920_vm8, %v4346_v32, %v5523_v55  ;;  %4365 = vrcp.f32 %v3042_v47 }
 0x234   : > { %v4350_v23 = vpop.eup %4349  ;;  %3166 = vst.msk [vmem:[%s5451_s17 + $0xa0] sm:$0xff] %vm3145_vm9, %v3133_v12  ;;  %v3136_v59 = vsel %vm2920_vm8, %v4348_v43, %v5527_v53 }
 0x235   : > { %v4352_v35 = vpop.eup %4351  ;;  %3169 = vst.msk [vmem:[%s5451_s17 + $0xb8] sm:$0xff] %vm3145_vm9, %v3136_v59  ;;  %v3134_v18 = vsel %vm2920_vm8, %v4350_v23, %v5531_v34 }
 0x236   : > { %v4354_v48 = vpop.eup %4353  ;;  %3167 = vst.msk [vmem:[%s5451_s17 + $0xa8] sm:$0xff] %vm3145_vm9, %v3134_v18  ;;  %v3047_v55 = vadd.f32 1.0, %v4352_v35 }
 0x237   : > { %v4356_v21 = vpop.eup %4355  ;;  %v3045_v2 = vadd.f32 1.0, %v4354_v48 }
 0x238   : > { %v4358_v61 = vpop.eup %4357  ;;  %4367 = vrcp.f32 %v3047_v55  ;;  %v3048_v56 = vadd.f32 1.0, %v4356_v21 }
 0x239   : > { %4369 = vrcp.f32 %v3045_v2  ;;  %v3046_v53 = vadd.f32 1.0, %v4358_v61 }
 0x23a   : > { %v4360_v39 = vpop.eup %4359  ;;  %4371 = vrcp.f32 %v3048_v56 }
 0x23b   : > { %v4362_v9 = vpop.eup %4361  ;;  %v3139_v34 = vsel %vm2920_vm8, %v4360_v39, %v5554_v24  ;;  %4373 = vrcp.f32 %v3046_v53 }
 0x23c   : > { %v4364_v17 = vpop.eup %4363  ;;  %3172 = vst.msk [vmem:[%s5451_s17 + $0xd0] sm:$0xff] %vm3145_vm9, %v3139_v34  ;;  %v3137_v37 = vsel %vm2920_vm8, %v4362_v9, %v5559_v27 }
 0x23d   : > { %v4366_v50 = vpop.eup %4365  ;;  %3170 = vst.msk [vmem:[%s5451_s17 + $0xc0] sm:$0xff] %vm3145_vm9, %v3137_v37  ;;  %v3140_v0 = vsel %vm2920_vm8, %v4364_v17, %v5562_v45 }
 0x23e   : > { %3173 = vst.msk [vmem:[%s5451_s17 + $0xd8] sm:$0xff] %vm3145_vm9, %v3140_v0  ;;  %v3138_v24 = vsel %vm2920_vm8, %v4366_v50, %v5566_v46 }
 0x23f   : > { %3171 = vst.msk [vmem:[%s5451_s17 + $0xc8] sm:$0xff] %vm3145_vm9, %v3138_v24 }
 0x242   : > { %v4368_v6 = vpop.eup %4367 }
 0x243   : > { %v4370_v30 = vpop.eup %4369  ;;  %v3143_v27 = vsel %vm2920_vm8, %v4368_v6, %v5590_v22 }
 0x244   : > { %v4372_v57 = vpop.eup %4371  ;;  %3176 = vst.msk [vmem:[%s5451_s17 + $0xf0] sm:$0xff] %vm3145_vm9, %v3143_v27  ;;  %v3141_v45 = vsel %vm2920_vm8, %v4370_v30, %v5595_v58 }
 0x245   : > { %v4374_v5 = vpop.eup %4373  ;;  %3174 = vst.msk [vmem:[%s5451_s17 + $0xe0] sm:$0xff] %vm3145_vm9, %v3141_v45  ;;  %v3144_v46 = vsel %vm2920_vm8, %v4372_v57, %v5598_v40 }
 0x246   : > { %3177 = vst.msk [vmem:[%s5451_s17 + $0xf8] sm:$0xff] %vm3145_vm9, %v3144_v46  ;;  %v3142_v22 = vsel %vm2920_vm8, %v4374_v5, %v5602_v3 }
 0x247   : > { %3175 = vst.msk [vmem:[%s5451_s17 + $0xe8] sm:$0xff] %vm3145_vm9, %v3142_v22 }
 0x248 PF: > { %s13_s12 = sadd.s32 1, %s4385_s12  }
 0x249   : > { %p10_p4 = scmp.ge.s32.totalorder %s13_s12, 4  }
 0x24b   :  { %12 = sbr.rel (!%p10_p4) target bundleno = 1 (0x1), region = 62 }

</bundles_post_ra>
